<compile_context>
chip_gen: v6e
topology: v6e:2x2x1
jax: 0.10.0
libtpu: 0.0.40
codegen_flags: <defaults>
</compile_context>

<pallas_src>
import functools
import math

import jax
import jax.numpy as jnp
from jax.experimental import pallas as pl
from jax.experimental.pallas import tpu as pltpu


# --------------------------- tile / budget helpers ---------------------------

def _pick_tile(dim, target, align):
    """Largest `align`-multiple divisor of `dim` that is <= target, else full."""
    if dim <= target:
        return dim
    t = (target // align) * align
    while t >= align:
        if dim % t == 0:
            return t
        t -= align
    return dim  # no aligned divisor -> full-extent block (exempt from tiling)


def _vmem_budget():
    """Generation-aware scoped-VMEM budget (leaves headroom for Mosaic scratch)."""
    cap = 128 << 20
    try:
        info = pltpu.get_tpu_info()
        cap = int(getattr(info, "vmem_capacity_bytes", cap))
    except Exception:
        pass
    # 3/4 of physical (48 MiB on a 64 MiB v7x TensorCore), never above 96 MiB.
    return min((cap * 3) // 4, 96 << 20)


# ----------------------- fused LN/matmul/bias/GELU/res -----------------------

def _fused_matmul_kernel(*refs, has_ln, has_bias, has_res, gelu):
    refs = list(refs)
    x_ref = refs.pop(0)
    lnw_ref = refs.pop(0) if has_ln else None
    lnb_ref = refs.pop(0) if has_ln else None
    w_ref = refs.pop(0)
    b_ref = refs.pop(0) if has_bias else None
    res_ref = refs.pop(0) if has_res else None
    o_ref = refs.pop(0)
    xln_ref = refs.pop(0) if has_ln else None   # VMEM scratch (tm, K) bf16

    if has_ln:
        # LN hoisted out of the N loop: compute once per row-tile (j == 0),
        # reuse the bf16 LN'd tile for every N tile.
        @pl.when(pl.program_id(1) == 0)
        def _():
            x = x_ref[...].astype(jnp.float32)
            mu = jnp.mean(x, axis=-1, keepdims=True)
            var = jnp.mean(jnp.square(x - mu), axis=-1, keepdims=True)
            xn = (x - mu) * jax.lax.rsqrt(var + 1e-5)
            xn = xn * lnw_ref[...] + lnb_ref[...]
            xln_ref[...] = xn.astype(jnp.bfloat16)
        x_in = xln_ref[...]
    else:
        x_in = x_ref[...]

    # Full-K block: single MXU matmul, f32 accumulation, no scratch accumulator.
    y = jnp.dot(x_in, w_ref[...], preferred_element_type=jnp.float32)
    if has_bias:
        y = y + b_ref[...]
    if gelu:
        # tanh-approximate GELU (matches nn.GELU(approximate='tanh'))
        c = 0.7978845608028654  # sqrt(2/pi)
        y = 0.5 * y * (1.0 + jnp.tanh(c * (y + 0.044715 * y * y * y)))
    if has_res:
        y = y + res_ref[...].astype(jnp.float32)
    o_ref[...] = y.astype(o_ref.dtype)


def fused_matmul(x, w, bias=None, ln=None, residual=None, gelu=False,
                 out_dtype=jnp.bfloat16, tm_target=1024, tn_target=512):
    """y = [LN](x) @ w [+ bias] [-> gelu] [+ residual].

    x / residual are bf16 (M, K)/(M, N); w is bf16 (K, N); output bf16 by
    default.  K is never tiled (full-K block); tm is shrunk to fit VMEM.
    """
    M, K = x.shape
    Kw, N = w.shape
    assert K == Kw
    has_ln = ln is not None
    has_bias = bias is not None
    has_res = residual is not None

    budget = _vmem_budget()
    tn = _pick_tile(N, tn_target, 128)
    out_bytes = jnp.dtype(out_dtype).itemsize

    def est(tm_):
        e = 2 * tm_ * K * 2                 # x tile, bf16, double-buffered
        e += 2 * K * tn * 2                 # weight tile
        e += 2 * tm_ * tn * out_bytes       # output tile
        if has_ln:
            e += 2 * (2 * K * 4) + tm_ * K * 2   # ln params + LN scratch
        if has_bias:
            e += 2 * tn * 4
        if has_res:
            e += 2 * tm_ * tn * 2
        return e + (2 << 20)                # slack for intermediates

    tm = _pick_tile(M, tm_target, 8)
    while est(tm) > budget and tm > 8:
        new_tm = _pick_tile(M, max(tm // 2, 8), 8)
        if new_tm >= tm:
            break
        tm = new_tm

    kern = functools.partial(_fused_matmul_kernel, has_ln=has_ln,
                             has_bias=has_bias, has_res=has_res, gelu=gelu)

    in_specs = [pl.BlockSpec((tm, K), lambda i, j: (i, 0))]
    args = [x.astype(jnp.bfloat16)]
    if has_ln:
        lnw, lnb = ln
        in_specs += [pl.BlockSpec((1, K), lambda i, j: (0, 0)),
                     pl.BlockSpec((1, K), lambda i, j: (0, 0))]
        args += [lnw.reshape(1, K).astype(jnp.float32),
                 lnb.reshape(1, K).astype(jnp.float32)]
    in_specs.append(pl.BlockSpec((K, tn), lambda i, j: (0, j)))
    args.append(w.astype(jnp.bfloat16))
    if has_bias:
        in_specs.append(pl.BlockSpec((1, tn), lambda i, j: (0, j)))
        args.append(bias.reshape(1, N).astype(jnp.float32))
    if has_res:
        in_specs.append(pl.BlockSpec((tm, tn), lambda i, j: (i, j)))
        args.append(residual.astype(jnp.bfloat16))

    scratch = [pltpu.VMEM((tm, K), jnp.bfloat16)] if has_ln else []
    vmem_limit = int(min(max(est(tm), 32 << 20), budget))
    # N axis must stay on one core when LN is hoisted under pl.when(j==0).
    dim_sem = ("parallel", "arbitrary" if has_ln else "parallel")

    return pl.pallas_call(
        kern,
        grid=(M // tm, N // tn),
        in_specs=in_specs,
        out_specs=pl.BlockSpec((tm, tn), lambda i, j: (i, j)),
        out_shape=jax.ShapeDtypeStruct((M, N), out_dtype),
        scratch_shapes=scratch,
        compiler_params=pltpu.CompilerParams(
            dimension_semantics=dim_sem,
            vmem_limit_bytes=vmem_limit),
    )(*args)


# ------------------------ flash-style causal attention ------------------------

def _flash_attn_kernel(q_ref, kv_ref, o_ref, acc_ref, m_ref, l_ref, *,
                       n_head, hd, scale, tq, tk):
    qi = pl.program_id(1)
    kj = pl.program_id(2)
    C = n_head * hd

    @pl.when(kj == 0)
    def _():
        m_ref[...] = jnp.full(m_ref.shape, -jnp.inf, dtype=jnp.float32)
        l_ref[...] = jnp.zeros(l_ref.shape, dtype=jnp.float32)
        acc_ref[...] = jnp.zeros(acc_ref.shape, dtype=jnp.float32)

    # Causal tile skipping: fully-masked KV tiles (kj > qi) do no compute, and
    # their index_map is clamped to the diagonal so no new DMA is issued.
    @pl.when(kj <= qi)
    def _():
        row = qi * tq + jax.lax.broadcasted_iota(jnp.int32, (tq, tk), 0)
        col = kj * tk + jax.lax.broadcasted_iota(jnp.int32, (tq, tk), 1)
        mask = col <= row

        q_all = q_ref[...]          # (tq, 3C) bf16 (q rows of the fused qkv)
        kv = kv_ref[...]            # (tk, 3C) bf16 (kv rows of the fused qkv)
        for h in range(n_head):     # per-head online softmax, state in scratch
            q = q_all[:, h * hd:(h + 1) * hd] * scale
            k = kv[:, C + h * hd:C + (h + 1) * hd]
            v = kv[:, 2 * C + h * hd:2 * C + (h + 1) * hd]
            s = jax.lax.dot_general(q, k, (((1,), (1,)), ((), ())),
                                    preferred_element_type=jnp.float32)  # (tq, tk)
            s = jnp.where(mask, s, -1e30)
            m_prev = m_ref[:, h:h + 1]
            m_new = jnp.maximum(m_prev, jnp.max(s, axis=-1, keepdims=True))
            alpha = jnp.exp(m_prev - m_new)
            p = jnp.exp(s - m_new)
            l_ref[:, h:h + 1] = alpha * l_ref[:, h:h + 1] + \
                jnp.sum(p, axis=-1, keepdims=True)
            acc_ref[:, h * hd:(h + 1) * hd] = (
                alpha * acc_ref[:, h * hd:(h + 1) * hd]
                + jnp.dot(p.astype(jnp.bfloat16), v,
                          preferred_element_type=jnp.float32))
            m_ref[:, h:h + 1] = m_new

    # Finalize on the diagonal tile (last KV tile that contributes): deferred
    # softmax normalization on the (tq, hd) accumulator, then ONE lane-dense
    # (tq, C) store to the output block.
    @pl.when(kj == qi)
    def _():
        for h in range(n_head):
            inv = pl.reciprocal(l_ref[:, h:h + 1], approx=True)   # EUP slot
            acc_ref[:, h * hd:(h + 1) * hd] = acc_ref[:, h * hd:(h + 1) * hd] * inv
        o_ref[...] = acc_ref[...].astype(o_ref.dtype)
    # TODO(synk): process heads two at a time (2*hd = 128 lanes) for the PV
    # matmul / scratch writes to get unmasked 128-wide stores on v6e/v7x.


def causal_attention(qkv, batch, seq, n_head):
    """qkv: (B*T, 3C) bf16 fused projection; returns (B*T, C) bf16."""
    M, threeC = qkv.shape
    C = threeC // 3
    hd = C // n_head
    scale = 1.0 / math.sqrt(hd)

    tile = _pick_tile(seq, 256, 8)          # tq == tk
    nq = seq // tile
    grid = (batch, nq, nq)

    kern = functools.partial(_flash_attn_kernel, n_head=n_head, hd=hd,
                             scale=scale, tq=tile, tk=tile)

    in_specs = [
        # q rows: constant across kj -> stays resident, fetched once per q tile
        pl.BlockSpec((tile, threeC), lambda b, qi, kj: (b * nq + qi, 0)),
        # kv rows: clamped to the diagonal so skipped causal tiles re-use the
        # already-resident block (no extra DMA)
        pl.BlockSpec((tile, threeC),
                     lambda b, qi, kj: (b * nq + jnp.minimum(kj, qi), 0)),
    ]
    out_spec = pl.BlockSpec((tile, C), lambda b, qi, kj: (b * nq + qi, 0))

    budget = _vmem_budget()
    est = 2 * (2 * tile * threeC * 2)           # q + kv bf16, double-buffered
    est += 2 * (tile * C * 2)                   # output bf16
    est += tile * C * 4 + 2 * tile * 128 * 4    # acc + m/l scratch (lane-padded)
    est += 4 * tile * tile * 4                  # s/p intermediates slack
    vmem_limit = int(min(max(est + (8 << 20), 32 << 20), budget))

    return pl.pallas_call(
        kern,
        grid=grid,
        in_specs=in_specs,
        out_specs=out_spec,
        out_shape=jax.ShapeDtypeStruct((M, C), jnp.bfloat16),
        scratch_shapes=[pltpu.VMEM((tile, C), jnp.float32),      # acc
                        pltpu.VMEM((tile, n_head), jnp.float32),  # m
                        pltpu.VMEM((tile, n_head), jnp.float32)], # l
        compiler_params=pltpu.CompilerParams(
            dimension_semantics=("parallel", "parallel", "arbitrary"),
            vmem_limit_bytes=vmem_limit),
    )(qkv, qkv)


# ------------------------- parameter init + forward --------------------------

def init_params(key, cfg):
    C = cfg["n_embd"]
    V = cfg["vocab_size"]
    BS = cfg["block_size"]
    L = cfg["n_layer"]
    std = 0.02
    proj_std = std * (2 * L) ** (-0.5)   # NANOGPT_SCALE_INIT on residual projections
    Vp = ((V + 127) // 128) * 128        # pad vocab so the N axis tiles cleanly

    def normal(k, shape, s):
        return (s * jax.random.normal(k, shape, dtype=jnp.float32)).astype(jnp.bfloat16)

    keys = jax.random.split(key, 3 + 4 * L)
    lm_w = normal(keys[2], (C, V), std)          # pre-transposed (C, V): no .T at runtime
    if Vp != V:
        lm_w = jnp.pad(lm_w, ((0, 0), (0, Vp - V)))

    params = {
        "wte": normal(keys[0], (V, C), std),
        "wpe": normal(keys[1], (BS, C), std),
        "lm_head_w": lm_w,                       # (C, Vp) bf16
        "lnf_w": jnp.ones((C,), jnp.float32),
        "lnf_b": jnp.zeros((C,), jnp.float32),
        "blocks": [],
    }
    for l in range(L):
        k0, k1, k2, k3 = keys[3 + 4 * l: 3 + 4 * l + 4]
        params["blocks"].append({
            "ln1_w": jnp.ones((C,), jnp.float32),
            "ln1_b": jnp.zeros((C,), jnp.float32),
            "attn_w": normal(k0, (C, 3 * C), std),
            "attn_b": jnp.zeros((3 * C,), jnp.float32),
            "proj_w": normal(k1, (C, C), proj_std),
            "proj_b": jnp.zeros((C,), jnp.float32),
            "ln2_w": jnp.ones((C,), jnp.float32),
            "ln2_b": jnp.zeros((C,), jnp.float32),
            "fc_w": normal(k2, (C, 4 * C), std),
            "fc_b": jnp.zeros((4 * C,), jnp.float32),
            "mlp_proj_w": normal(k3, (4 * C, C), proj_std),
            "mlp_proj_b": jnp.zeros((C,), jnp.float32),
        })
    return params


def gpt2_forward(params, idx, cfg):
    B, T = idx.shape
    C = cfg["n_embd"]
    H = cfg["n_head"]
    V = cfg["vocab_size"]
    assert T <= cfg["block_size"]

    # Embedding lookups (data-dependent gather) stay in plain JAX glue.
    tok_emb = params["wte"][idx].astype(jnp.float32)        # (B, T, C)
    pos_emb = params["wpe"][:T].astype(jnp.float32)         # (T, C)
    x = (tok_emb + pos_emb[None]).reshape(B * T, C).astype(jnp.bfloat16)

    for blk in params["blocks"]:
        # --- attention sub-block: LN1+qkv fused; flash attn; proj+residual fused
        qkv = fused_matmul(x, blk["attn_w"], bias=blk["attn_b"],
                           ln=(blk["ln1_w"], blk["ln1_b"]))           # (B*T, 3C)
        attn_out = causal_attention(qkv, B, T, H)                      # (B*T, C)
        x = fused_matmul(attn_out, blk["proj_w"], bias=blk["proj_b"],
                         residual=x)
        # --- MLP sub-block: LN2+fc+GELU fused; mlp_proj+residual fused
        h = fused_matmul(x, blk["fc_w"], bias=blk["fc_b"],
                         ln=(blk["ln2_w"], blk["ln2_b"]), gelu=True)  # (B*T, 4C)
        x = fused_matmul(h, blk["mlp_proj_w"], bias=blk["mlp_proj_b"],
                         residual=x)

    # ln_f fused into the lm_head matmul (weight stored pre-transposed, padded).
    logits = fused_matmul(x, params["lm_head_w"],
                          ln=(params["lnf_w"], params["lnf_b"]))      # (B*T, Vp) bf16
    logits = logits[:, :V]                                            # drop vocab pad
    return logits.reshape(B, T, V)
    # TODO(synk): cross-entropy loss path (targets) omitted — the PyTorch
    # forward returns logits only when targets is None.


# ----------------------------------- main ------------------------------------

if __name__ == "__main__":
    cfg = dict(vocab_size=64, block_size=16, n_layer=2, n_head=4, n_embd=32)
    B, T = 2, 8

    key = jax.random.PRNGKey(0)
    pkey, ikey = jax.random.split(key)
    params = init_params(pkey, cfg)
    idx = jax.random.randint(ikey, (B, T), 0, cfg["vocab_size"], dtype=jnp.int32)

    fwd = jax.jit(functools.partial(gpt2_forward, cfg=cfg))
    logits = fwd(params, idx)
    jax.block_until_ready(logits)

    assert logits.shape == (B, T, cfg["vocab_size"])
    assert bool(jnp.all(jnp.isfinite(logits.astype(jnp.float32))))
    print("KERNEL_OK")
</pallas_src>

<mosaic_0001>
module attributes {stable_mosaic.version = 11 : i64} {
  func.func @_fused_matmul_kernel(%arg0: i32, %arg1: i32, %arg2: memref<16x32xbf16, #tpu.memory_space<vmem>>, %arg3: memref<32x32xbf16, #tpu.memory_space<vmem>>, %arg4: memref<1x32xf32, #tpu.memory_space<vmem>>, %arg5: memref<16x32xbf16, #tpu.memory_space<vmem>>, %arg6: memref<16x32xbf16, #tpu.memory_space<vmem>>) attributes {dimension_semantics = [#tpu.dimension_semantics<parallel>, #tpu.dimension_semantics<parallel>], iteration_bounds = array<i64: 1, 1>, scalar_prefetch = 0 : i64, scratch_operands = 0 : i64, tpu.core_type = #tpu.core_type<tc>, window_params = [{transform_indices = @transform_0, window_bounds = array<i64: 16, 32>}, {transform_indices = @transform_1, window_bounds = array<i64: 32, 32>}, {transform_indices = @transform_2, window_bounds = array<i64: 1, 32>}, {transform_indices = @transform_3, window_bounds = array<i64: 16, 32>}, {transform_indices = @transform_4, window_bounds = array<i64: 16, 32>}]} {
    %c0 = arith.constant 0 : index
    %c0_0 = arith.constant 0 : index
    %0 = vector.load %arg2[%c0, %c0_0] : memref<16x32xbf16, #tpu.memory_space<vmem>>, vector<16x32xbf16>
    %c0_1 = arith.constant 0 : index
    %c0_2 = arith.constant 0 : index
    %1 = vector.load %arg3[%c0_1, %c0_2] : memref<32x32xbf16, #tpu.memory_space<vmem>>, vector<32x32xbf16>
    %cst = arith.constant dense<0.000000e+00> : vector<16x32xf32>
    %2 = tpu.matmul %0, %1, %cst {dimension_numbers = #tpu.dot_dimension_numbers<[1], [0], [0], [1], [0, 0, 1, 1], [], []>} : vector<16x32xbf16>, vector<32x32xbf16>, vector<16x32xf32> -> vector<16x32xf32>
    %c0_3 = arith.constant 0 : index
    %c0_4 = arith.constant 0 : index
    %3 = vector.load %arg4[%c0_3, %c0_4] : memref<1x32xf32, #tpu.memory_space<vmem>>, vector<1x32xf32>
    %4 = vector.broadcast %3 : vector<1x32xf32> to vector<16x32xf32>
    %5 = arith.addf %2, %4 : vector<16x32xf32>
    %c0_5 = arith.constant 0 : index
    %c0_6 = arith.constant 0 : index
    %6 = vector.load %arg5[%c0_5, %c0_6] : memref<16x32xbf16, #tpu.memory_space<vmem>>, vector<16x32xbf16>
    %7 = arith.extf %6 : vector<16x32xbf16> to vector<16x32xf32>
    %8 = arith.addf %5, %7 : vector<16x32xf32>
    %9 = arith.truncf %8 : vector<16x32xf32> to vector<16x32xbf16>
    %c0_7 = arith.constant 0 : index
    %c0_8 = arith.constant 0 : index
    %10 = vector.load %arg6[%c0_7, %c0_8] : memref<16x32xbf16, #tpu.memory_space<vmem>>, vector<16x32xbf16>
    tpu.vector_store %arg6[%c0_7, %c0_8], %9 {strides = array<i32>} : memref<16x32xbf16, #tpu.memory_space<vmem>>, vector<16x32xbf16>,
    return
  }
  func.func @transform_0(%arg0: i32, %arg1: i32) -> (i32, i32) {
    %c0_i32 = arith.constant 0 : i32
    %c0_i32_0 = arith.constant 0 : i32
    return %arg0, %c0_i32 : i32, i32
  }
  func.func @transform_1(%arg0: i32, %arg1: i32) -> (i32, i32) {
    %c0_i32 = arith.constant 0 : i32
    %c0_i32_0 = arith.constant 0 : i32
    return %c0_i32, %arg1 : i32, i32
  }
  func.func @transform_2(%arg0: i32, %arg1: i32) -> (i32, i32) {
    %c0_i32 = arith.constant 0 : i32
    %c0_i32_0 = arith.constant 0 : i32
    return %c0_i32, %arg1 : i32, i32
  }
  func.func @transform_3(%arg0: i32, %arg1: i32) -> (i32, i32) {
    %c0_i32 = arith.constant 0 : i32
    return %arg0, %arg1 : i32, i32
  }
  func.func @transform_4(%arg0: i32, %arg1: i32) -> (i32, i32) {
    %c0_i32 = arith.constant 0 : i32
    return %arg0, %arg1 : i32, i32
  }
}

module attributes {stable_mosaic.version = 11 : i64} {
  func.func @_fused_matmul_kernel(%arg0: i32, %arg1: i32, %arg2: memref<16x32xbf16, #tpu.memory_space<vmem>>, %arg3: memref<1x32xf32, #tpu.memory_space<vmem>>, %arg4: memref<1x32xf32, #tpu.memory_space<vmem>>, %arg5: memref<32x96xbf16, #tpu.memory_space<vmem>>, %arg6: memref<1x96xf32, #tpu.memory_space<vmem>>, %arg7: memref<16x96xbf16, #tpu.memory_space<vmem>>, %arg8: memref<16x32xbf16, #tpu.memory_space<vmem>>) attributes {dimension_semantics = [#tpu.dimension_semantics<parallel>, #tpu.dimension_semantics<arbitrary>], iteration_bounds = array<i64: 1, 1>, scalar_prefetch = 0 : i64, scratch_operands = 1 : i64, tpu.core_type = #tpu.core_type<tc>, window_params = [{transform_indices = @transform_0, window_bounds = array<i64: 16, 32>}, {pipeline_mode = #tpu.pipeline_mode<synchronous>, transform_indices = @transform_1, window_bounds = array<i64: 1, 32>}, {pipeline_mode = #tpu.pipeline_mode<synchronous>, transform_indices = @transform_2, window_bounds = array<i64: 1, 32>}, {transform_indices = @transform_3, window_bounds = array<i64: 32, 96>}, {transform_indices = @transform_4, window_bounds = array<i64: 1, 96>}, {transform_indices = @transform_5, window_bounds = array<i64: 16, 96>}]} {
    %c0_i32 = arith.constant 0 : i32
    %0 = arith.cmpi eq, %arg1, %c0_i32 : i32
    %1 = arith.extui %0 : i1 to i32
    %c0_i32_0 = arith.constant 0 : i32
    %2 = arith.cmpi ne, %1, %c0_i32_0 : i32
    scf.if %2 {
      %c0_8 = arith.constant 0 : index
      %c0_9 = arith.constant 0 : index
      %11 = vector.load %arg2[%c0_8, %c0_9] : memref<16x32xbf16, #tpu.memory_space<vmem>>, vector<16x32xbf16>
      %12 = arith.extf %11 : vector<16x32xbf16> to vector<16x32xf32>
      %cst_10 = arith.constant dense<0.000000e+00> : vector<16xf32>
      %13 = vector.multi_reduction <add>, %12, %cst_10 [1] : vector<16x32xf32> to vector<16xf32>
      %14 = vector.shape_cast %13 : vector<16xf32> to vector<16x1xf32>
      %cst_11 = arith.constant 3.200000e+01 : f32
      %15 = vector.broadcast %cst_11 : f32 to vector<16x1xf32>
      %16 = arith.divf %14, %15 : vector<16x1xf32>
      %17 = vector.broadcast %16 : vector<16x1xf32> to vector<16x32xf32>
      %18 = arith.subf %12, %17 : vector<16x32xf32>
      %19 = arith.mulf %18, %18 : vector<16x32xf32>
      %cst_12 = arith.constant dense<0.000000e+00> : vector<16xf32>
      %20 = vector.multi_reduction <add>, %19, %cst_12 [1] : vector<16x32xf32> to vector<16xf32>
      %21 = vector.shape_cast %20 : vector<16xf32> to vector<16x1xf32>
      %cst_13 = arith.constant 3.200000e+01 : f32
      %22 = vector.broadcast %cst_13 : f32 to vector<16x1xf32>
      %23 = arith.divf %21, %22 : vector<16x1xf32>
      %24 = vector.broadcast %16 : vector<16x1xf32> to vector<16x32xf32>
      %25 = arith.subf %12, %24 : vector<16x32xf32>
      %cst_14 = arith.constant 9.99999974E-6 : f32
      %26 = vector.broadcast %cst_14 : f32 to vector<16x1xf32>
      %27 = arith.addf %23, %26 : vector<16x1xf32>
      %28 = math.rsqrt %27 : vector<16x1xf32>
      %29 = vector.broadcast %28 : vector<16x1xf32> to vector<16x32xf32>
      %30 = arith.mulf %25, %29 : vector<16x32xf32>
      %c0_15 = arith.constant 0 : index
      %c0_16 = arith.constant 0 : index
      %31 = vector.load %arg3[%c0_15, %c0_16] : memref<1x32xf32, #tpu.memory_space<vmem>>, vector<1x32xf32>
      %32 = vector.broadcast %31 : vector<1x32xf32> to vector<16x32xf32>
      %33 = arith.mulf %30, %32 : vector<16x32xf32>
      %c0_17 = arith.constant 0 : index
      %c0_18 = arith.constant 0 : index
      %34 = vector.load %arg4[%c0_17, %c0_18] : memref<1x32xf32, #tpu.memory_space<vmem>>, vector<1x32xf32>
      %35 = vector.broadcast %34 : vector<1x32xf32> to vector<16x32xf32>
      %36 = arith.addf %33, %35 : vector<16x32xf32>
      %37 = arith.truncf %36 : vector<16x32xf32> to vector<16x32xbf16>
      %c0_19 = arith.constant 0 : index
      %c0_20 = arith.constant 0 : index
      %38 = vector.load %arg8[%c0_19, %c0_20] : memref<16x32xbf16, #tpu.memory_space<vmem>>, vector<16x32xbf16>
      tpu.vector_store %arg8[%c0_19, %c0_20], %37 {strides = array<i32>} : memref<16x32xbf16, #tpu.memory_space<vmem>>, vector<16x32xbf16>,
    } else {
    }
    %c0 = arith.constant 0 : index
    %c0_1 = arith.constant 0 : index
    %3 = vector.load %arg8[%c0, %c0_1] : memref<16x32xbf16, #tpu.memory_space<vmem>>, vector<16x32xbf16>
    %c0_2 = arith.constant 0 : index
    %c0_3 = arith.constant 0 : index
    %4 = vector.load %arg5[%c0_2, %c0_3] : memref<32x96xbf16, #tpu.memory_space<vmem>>, vector<32x96xbf16>
    %cst = arith.constant dense<0.000000e+00> : vector<16x96xf32>
    %5 = tpu.matmul %3, %4, %cst {dimension_numbers = #tpu.dot_dimension_numbers<[1], [0], [0], [1], [0, 0, 1, 1], [], []>} : vector<16x32xbf16>, vector<32x96xbf16>, vector<16x96xf32> -> vector<16x96xf32>
    %c0_4 = arith.constant 0 : index
    %c0_5 = arith.constant 0 : index
    %6 = vector.load %arg6[%c0_4, %c0_5] : memref<1x96xf32, #tpu.memory_space<vmem>>, vector<1x96xf32>
    %7 = vector.broadcast %6 : vector<1x96xf32> to vector<16x96xf32>
    %8 = arith.addf %5, %7 : vector<16x96xf32>
    %9 = arith.truncf %8 : vector<16x96xf32> to vector<16x96xbf16>
    %c0_6 = arith.constant 0 : index
    %c0_7 = arith.constant 0 : index
    %10 = vector.load %arg7[%c0_6, %c0_7] : memref<16x96xbf16, #tpu.memory_space<vmem>>, vector<16x96xbf16>
    tpu.vector_store %arg7[%c0_6, %c0_7], %9 {strides = array<i32>} : memref<16x96xbf16, #tpu.memory_space<vmem>>, vector<16x96xbf16>,
    return
  }
  func.func @transform_0(%arg0: i32, %arg1: i32) -> (i32, i32) {
    %c0_i32 = arith.constant 0 : i32
    %c0_i32_0 = arith.constant 0 : i32
    return %arg0, %c0_i32 : i32, i32
  }
  func.func @transform_1(%arg0: i32, %arg1: i32) -> (i32, i32) {
    %c0_i32 = arith.constant 0 : i32
    %c0_i32_0 = arith.constant 0 : i32
    %c0_i32_1 = arith.constant 0 : i32
    return %c0_i32, %c0_i32_0 : i32, i32
  }
  func.func @transform_2(%arg0: i32, %arg1: i32) -> (i32, i32) {
    %c0_i32 = arith.constant 0 : i32
    %c0_i32_0 = arith.constant 0 : i32
    %c0_i32_1 = arith.constant 0 : i32
    return %c0_i32, %c0_i32_0 : i32, i32
  }
  func.func @transform_3(%arg0: i32, %arg1: i32) -> (i32, i32) {
    %c0_i32 = arith.constant 0 : i32
    %c0_i32_0 = arith.constant 0 : i32
    return %c0_i32, %arg1 : i32, i32
  }
  func.func @transform_4(%arg0: i32, %arg1: i32) -> (i32, i32) {
    %c0_i32 = arith.constant 0 : i32
    %c0_i32_0 = arith.constant 0 : i32
    return %c0_i32, %arg1 : i32, i32
  }
  func.func @transform_5(%arg0: i32, %arg1: i32) -> (i32, i32) {
    %c0_i32 = arith.constant 0 : i32
    return %arg0, %arg1 : i32, i32
  }
}

module attributes {stable_mosaic.version = 11 : i64} {
  func.func @_fused_matmul_kernel(%arg0: i32, %arg1: i32, %arg2: memref<16x32xbf16, #tpu.memory_space<vmem>>, %arg3: memref<1x32xf32, #tpu.memory_space<vmem>>, %arg4: memref<1x32xf32, #tpu.memory_space<vmem>>, %arg5: memref<32x128xbf16, #tpu.memory_space<vmem>>, %arg6: memref<1x128xf32, #tpu.memory_space<vmem>>, %arg7: memref<16x128xbf16, #tpu.memory_space<vmem>>, %arg8: memref<16x32xbf16, #tpu.memory_space<vmem>>) attributes {dimension_semantics = [#tpu.dimension_semantics<parallel>, #tpu.dimension_semantics<arbitrary>], iteration_bounds = array<i64: 1, 1>, scalar_prefetch = 0 : i64, scratch_operands = 1 : i64, tpu.core_type = #tpu.core_type<tc>, window_params = [{transform_indices = @transform_0, window_bounds = array<i64: 16, 32>}, {pipeline_mode = #tpu.pipeline_mode<synchronous>, transform_indices = @transform_1, window_bounds = array<i64: 1, 32>}, {pipeline_mode = #tpu.pipeline_mode<synchronous>, transform_indices = @transform_2, window_bounds = array<i64: 1, 32>}, {transform_indices = @transform_3, window_bounds = array<i64: 32, 128>}, {transform_indices = @transform_4, window_bounds = array<i64: 1, 128>}, {transform_indices = @transform_5, window_bounds = array<i64: 16, 128>}]} {
    %c0_i32 = arith.constant 0 : i32
    %0 = arith.cmpi eq, %arg1, %c0_i32 : i32
    %1 = arith.extui %0 : i1 to i32
    %c0_i32_0 = arith.constant 0 : i32
    %2 = arith.cmpi ne, %1, %c0_i32_0 : i32
    scf.if %2 {
      %c0_12 = arith.constant 0 : index
      %c0_13 = arith.constant 0 : index
      %24 = vector.load %arg2[%c0_12, %c0_13] : memref<16x32xbf16, #tpu.memory_space<vmem>>, vector<16x32xbf16>
      %25 = arith.extf %24 : vector<16x32xbf16> to vector<16x32xf32>
      %cst_14 = arith.constant dense<0.000000e+00> : vector<16xf32>
      %26 = vector.multi_reduction <add>, %25, %cst_14 [1] : vector<16x32xf32> to vector<16xf32>
      %27 = vector.shape_cast %26 : vector<16xf32> to vector<16x1xf32>
      %cst_15 = arith.constant 3.200000e+01 : f32
      %28 = vector.broadcast %cst_15 : f32 to vector<16x1xf32>
      %29 = arith.divf %27, %28 : vector<16x1xf32>
      %30 = vector.broadcast %29 : vector<16x1xf32> to vector<16x32xf32>
      %31 = arith.subf %25, %30 : vector<16x32xf32>
      %32 = arith.mulf %31, %31 : vector<16x32xf32>
      %cst_16 = arith.constant dense<0.000000e+00> : vector<16xf32>
      %33 = vector.multi_reduction <add>, %32, %cst_16 [1] : vector<16x32xf32> to vector<16xf32>
      %34 = vector.shape_cast %33 : vector<16xf32> to vector<16x1xf32>
      %cst_17 = arith.constant 3.200000e+01 : f32
      %35 = vector.broadcast %cst_17 : f32 to vector<16x1xf32>
      %36 = arith.divf %34, %35 : vector<16x1xf32>
      %37 = vector.broadcast %29 : vector<16x1xf32> to vector<16x32xf32>
      %38 = arith.subf %25, %37 : vector<16x32xf32>
      %cst_18 = arith.constant 9.99999974E-6 : f32
      %39 = vector.broadcast %cst_18 : f32 to vector<16x1xf32>
      %40 = arith.addf %36, %39 : vector<16x1xf32>
      %41 = math.rsqrt %40 : vector<16x1xf32>
      %42 = vector.broadcast %41 : vector<16x1xf32> to vector<16x32xf32>
      %43 = arith.mulf %38, %42 : vector<16x32xf32>
      %c0_19 = arith.constant 0 : index
      %c0_20 = arith.constant 0 : index
      %44 = vector.load %arg3[%c0_19, %c0_20] : memref<1x32xf32, #tpu.memory_space<vmem>>, vector<1x32xf32>
      %45 = vector.broadcast %44 : vector<1x32xf32> to vector<16x32xf32>
      %46 = arith.mulf %43, %45 : vector<16x32xf32>
      %c0_21 = arith.constant 0 : index
      %c0_22 = arith.constant 0 : index
      %47 = vector.load %arg4[%c0_21, %c0_22] : memref<1x32xf32, #tpu.memory_space<vmem>>, vector<1x32xf32>
      %48 = vector.broadcast %47 : vector<1x32xf32> to vector<16x32xf32>
      %49 = arith.addf %46, %48 : vector<16x32xf32>
      %50 = arith.truncf %49 : vector<16x32xf32> to vector<16x32xbf16>
      %c0_23 = arith.constant 0 : index
      %c0_24 = arith.constant 0 : index
      %51 = vector.load %arg8[%c0_23, %c0_24] : memref<16x32xbf16, #tpu.memory_space<vmem>>, vector<16x32xbf16>
      tpu.vector_store %arg8[%c0_23, %c0_24], %50 {strides = array<i32>} : memref<16x32xbf16, #tpu.memory_space<vmem>>, vector<16x32xbf16>,
    } else {
    }
    %c0 = arith.constant 0 : index
    %c0_1 = arith.constant 0 : index
    %3 = vector.load %arg8[%c0, %c0_1] : memref<16x32xbf16, #tpu.memory_space<vmem>>, vector<16x32xbf16>
    %c0_2 = arith.constant 0 : index
    %c0_3 = arith.constant 0 : index
    %4 = vector.load %arg5[%c0_2, %c0_3] : memref<32x128xbf16, #tpu.memory_space<vmem>>, vector<32x128xbf16>
    %cst = arith.constant dense<0.000000e+00> : vector<16x128xf32>
    %5 = tpu.matmul %3, %4, %cst {dimension_numbers = #tpu.dot_dimension_numbers<[1], [0], [0], [1], [0, 0, 1, 1], [], []>} : vector<16x32xbf16>, vector<32x128xbf16>, vector<16x128xf32> -> vector<16x128xf32>
    %c0_4 = arith.constant 0 : index
    %c0_5 = arith.constant 0 : index
    %6 = vector.load %arg6[%c0_4, %c0_5] : memref<1x128xf32, #tpu.memory_space<vmem>>, vector<1x128xf32>
    %7 = vector.broadcast %6 : vector<1x128xf32> to vector<16x128xf32>
    %8 = arith.addf %5, %7 : vector<16x128xf32>
    %cst_6 = arith.constant 5.000000e-01 : f32
    %9 = vector.broadcast %cst_6 : f32 to vector<16x128xf32>
    %10 = arith.mulf %9, %8 : vector<16x128xf32>
    %cst_7 = arith.constant 4.471500e-02 : f32
    %11 = vector.broadcast %cst_7 : f32 to vector<16x128xf32>
    %12 = arith.mulf %11, %8 : vector<16x128xf32>
    %13 = arith.mulf %12, %8 : vector<16x128xf32>
    %14 = arith.mulf %13, %8 : vector<16x128xf32>
    %15 = arith.addf %8, %14 : vector<16x128xf32>
    %cst_8 = arith.constant 0.797884583 : f32
    %16 = vector.broadcast %cst_8 : f32 to vector<16x128xf32>
    %17 = arith.mulf %16, %15 : vector<16x128xf32>
    %18 = math.tanh %17 : vector<16x128xf32>
    %cst_9 = arith.constant 1.000000e+00 : f32
    %19 = vector.broadcast %cst_9 : f32 to vector<16x128xf32>
    %20 = arith.addf %19, %18 : vector<16x128xf32>
    %21 = arith.mulf %10, %20 : vector<16x128xf32>
    %22 = arith.truncf %21 : vector<16x128xf32> to vector<16x128xbf16>
    %c0_10 = arith.constant 0 : index
    %c0_11 = arith.constant 0 : index
    %23 = vector.load %arg7[%c0_10, %c0_11] : memref<16x128xbf16, #tpu.memory_space<vmem>>, vector<16x128xbf16>
    tpu.vector_store %arg7[%c0_10, %c0_11], %22 {strides = array<i32>} : memref<16x128xbf16, #tpu.memory_space<vmem>>, vector<16x128xbf16>,
    return
  }
  func.func @transform_0(%arg0: i32, %arg1: i32) -> (i32, i32) {
    %c0_i32 = arith.constant 0 : i32
    %c0_i32_0 = arith.constant 0 : i32
    return %arg0, %c0_i32 : i32, i32
  }
  func.func @transform_1(%arg0: i32, %arg1: i32) -> (i32, i32) {
    %c0_i32 = arith.constant 0 : i32
    %c0_i32_0 = arith.constant 0 : i32
    %c0_i32_1 = arith.constant 0 : i32
    return %c0_i32, %c0_i32_0 : i32, i32
  }
  func.func @transform_2(%arg0: i32, %arg1: i32) -> (i32, i32) {
    %c0_i32 = arith.constant 0 : i32
    %c0_i32_0 = arith.constant 0 : i32
    %c0_i32_1 = arith.constant 0 : i32
    return %c0_i32, %c0_i32_0 : i32, i32
  }
  func.func @transform_3(%arg0: i32, %arg1: i32) -> (i32, i32) {
    %c0_i32 = arith.constant 0 : i32
    %c0_i32_0 = arith.constant 0 : i32
    return %c0_i32, %arg1 : i32, i32
  }
  func.func @transform_4(%arg0: i32, %arg1: i32) -> (i32, i32) {
    %c0_i32 = arith.constant 0 : i32
    %c0_i32_0 = arith.constant 0 : i32
    return %c0_i32, %arg1 : i32, i32
  }
  func.func @transform_5(%arg0: i32, %arg1: i32) -> (i32, i32) {
    %c0_i32 = arith.constant 0 : i32
    return %arg0, %arg1 : i32, i32
  }
}

module attributes {stable_mosaic.version = 11 : i64} {
  func.func @_flash_attn_kernel(%arg0: i32, %arg1: i32, %arg2: i32, %arg3: memref<8x96xbf16, #tpu.memory_space<vmem>>, %arg4: memref<8x96xbf16, #tpu.memory_space<vmem>>, %arg5: memref<8x32xbf16, #tpu.memory_space<vmem>>, %arg6: memref<8x32xf32, #tpu.memory_space<vmem>>, %arg7: memref<8x4xf32, #tpu.memory_space<vmem>>, %arg8: memref<8x4xf32, #tpu.memory_space<vmem>>) attributes {dimension_semantics = [#tpu.dimension_semantics<parallel>, #tpu.dimension_semantics<parallel>, #tpu.dimension_semantics<arbitrary>], iteration_bounds = array<i64: 2, 1, 1>, scalar_prefetch = 0 : i64, scratch_operands = 3 : i64, tpu.core_type = #tpu.core_type<tc>, window_params = [{transform_indices = @transform_0, window_bounds = array<i64: 8, 96>}, {transform_indices = @transform_1, window_bounds = array<i64: 8, 96>}, {transform_indices = @transform_2, window_bounds = array<i64: 8, 32>}]} {
    %c0_i32 = arith.constant 0 : i32
    %0 = arith.cmpi eq, %arg2, %c0_i32 : i32
    %1 = arith.extui %0 : i1 to i32
    %c0_i32_0 = arith.constant 0 : i32
    %2 = arith.cmpi ne, %1, %c0_i32_0 : i32
    scf.if %2 {
      %cst = arith.constant 0xFF800000 : f32
      %9 = vector.broadcast %cst : f32 to vector<8x4xf32>
      %c0 = arith.constant 0 : index
      %c0_3 = arith.constant 0 : index
      %10 = vector.load %arg7[%c0, %c0_3] : memref<8x4xf32, #tpu.memory_space<vmem>>, vector<8x4xf32>
      tpu.vector_store %arg7[%c0, %c0_3], %9 {strides = array<i32>} : memref<8x4xf32, #tpu.memory_space<vmem>>, vector<8x4xf32>,
      %cst_4 = arith.constant 0.000000e+00 : f32
      %11 = vector.broadcast %cst_4 : f32 to vector<8x4xf32>
      %c0_5 = arith.constant 0 : index
      %c0_6 = arith.constant 0 : index
      %12 = vector.load %arg8[%c0_5, %c0_6] : memref<8x4xf32, #tpu.memory_space<vmem>>, vector<8x4xf32>
      tpu.vector_store %arg8[%c0_5, %c0_6], %11 {strides = array<i32>} : memref<8x4xf32, #tpu.memory_space<vmem>>, vector<8x4xf32>,
      %cst_7 = arith.constant 0.000000e+00 : f32
      %13 = vector.broadcast %cst_7 : f32 to vector<8x32xf32>
      %c0_8 = arith.constant 0 : index
      %c0_9 = arith.constant 0 : index
      %14 = vector.load %arg6[%c0_8, %c0_9] : memref<8x32xf32, #tpu.memory_space<vmem>>, vector<8x32xf32>
      tpu.vector_store %arg6[%c0_8, %c0_9], %13 {strides = array<i32>} : memref<8x32xf32, #tpu.memory_space<vmem>>, vector<8x32xf32>,
    } else {
    }
    %3 = arith.cmpi sle, %arg2, %arg1 : i32
    %4 = arith.extui %3 : i1 to i32
    %c0_i32_1 = arith.constant 0 : i32
    %5 = arith.cmpi ne, %4, %c0_i32_1 : i32
    scf.if %5 {
      %c8_i32 = arith.constant 8 : i32
      %9 = arith.muli %arg1, %c8_i32 : i32
      %10 = tpu.iota {dimensions = array<i32: 0>} : vector<8x8xi32>
      %11 = vector.broadcast %9 : i32 to vector<8x8xi32>
      %12 = arith.addi %11, %10 : vector<8x8xi32>
      %c8_i32_3 = arith.constant 8 : i32
      %13 = arith.muli %arg2, %c8_i32_3 : i32
      %14 = tpu.iota {dimensions = array<i32: 1>} : vector<8x8xi32>
      %15 = vector.broadcast %13 : i32 to vector<8x8xi32>
      %16 = arith.addi %15, %14 : vector<8x8xi32>
      %17 = arith.cmpi sle, %16, %12 : vector<8x8xi32>
      %c0 = arith.constant 0 : index
      %c0_4 = arith.constant 0 : index
      %18 = vector.load %arg3[%c0, %c0_4] : memref<8x96xbf16, #tpu.memory_space<vmem>>, vector<8x96xbf16>
      %c0_5 = arith.constant 0 : index
      %c0_6 = arith.constant 0 : index
      %19 = vector.load %arg4[%c0_5, %c0_6] : memref<8x96xbf16, #tpu.memory_space<vmem>>, vector<8x96xbf16>
      %20 = vector.extract_strided_slice %18 {offsets = [0, 0], sizes = [8, 8], strides = [1, 1]} : vector<8x96xbf16> to vector<8x8xbf16>
      %cst = arith.constant 3.535160e-01 : bf16
      %21 = vector.broadcast %cst : bf16 to vector<8x8xbf16>
      %22 = arith.mulf %20, %21 : vector<8x8xbf16>
      %23 = vector.extract_strided_slice %19 {offsets = [0, 32], sizes = [8, 8], strides = [1, 1]} : vector<8x96xbf16> to vector<8x8xbf16>
      %24 = vector.extract_strided_slice %19 {offsets = [0, 64], sizes = [8, 8], strides = [1, 1]} : vector<8x96xbf16> to vector<8x8xbf16>
      %cst_7 = arith.constant dense<0.000000e+00> : vector<8x8xf32>
      %25 = tpu.matmul %22, %23, %cst_7 {dimension_numbers = #tpu.dot_dimension_numbers<[1], [1], [0], [0], [0, 0, 1, 0], [], []>} : vector<8x8xbf16>, vector<8x8xbf16>, vector<8x8xf32> -> vector<8x8xf32>
      %cst_8 = arith.constant -1.000000e+30 : f32
      %26 = vector.broadcast %cst_8 : f32 to vector<8x8xf32>
      %27 = arith.select %17, %25, %26 : vector<8x8xi1>, vector<8x8xf32>
      %c0_9 = arith.constant 0 : index
      %c0_10 = arith.constant 0 : index
      %28 = vector.load %arg7[%c0_9, %c0_10] : memref<8x4xf32, #tpu.memory_space<vmem>>, vector<8x1xf32>
      %cst_11 = arith.constant dense<0xFF800000> : vector<8xf32>
      %29 = vector.multi_reduction <maximumf>, %27, %cst_11 [1] : vector<8x8xf32> to vector<8xf32>
      %30 = vector.shape_cast %29 : vector<8xf32> to vector<8x1xf32>
      %31 = arith.maximumf %28, %30 : vector<8x1xf32>
      %32 = arith.subf %28, %31 : vector<8x1xf32>
      %33 = math.exp %32 : vector<8x1xf32>
      %34 = vector.broadcast %31 : vector<8x1xf32> to vector<8x8xf32>
      %35 = arith.subf %27, %34 : vector<8x8xf32>
      %36 = math.exp %35 : vector<8x8xf32>
      %c0_12 = arith.constant 0 : index
      %c0_13 = arith.constant 0 : index
      %37 = vector.load %arg8[%c0_12, %c0_13] : memref<8x4xf32, #tpu.memory_space<vmem>>, vector<8x1xf32>
      %38 = arith.mulf %33, %37 : vector<8x1xf32>
      %cst_14 = arith.constant dense<0.000000e+00> : vector<8xf32>
      %39 = vector.multi_reduction <add>, %36, %cst_14 [1] : vector<8x8xf32> to vector<8xf32>
      %40 = vector.shape_cast %39 : vector<8xf32> to vector<8x1xf32>
      %41 = arith.addf %38, %40 : vector<8x1xf32>
      %c0_15 = arith.constant 0 : index
      %c0_16 = arith.constant 0 : index
      %42 = vector.load %arg8[%c0_15, %c0_16] : memref<8x4xf32, #tpu.memory_space<vmem>>, vector<8x1xf32>
      tpu.vector_store %arg8[%c0_15, %c0_16], %41 {strides = array<i32>} : memref<8x4xf32, #tpu.memory_space<vmem>>, vector<8x1xf32>,
      %c0_17 = arith.constant 0 : index
      %c0_18 = arith.constant 0 : index
      %43 = vector.load %arg6[%c0_17, %c0_18] : memref<8x32xf32, #tpu.memory_space<vmem>>, vector<8x8xf32>
      %44 = vector.broadcast %33 : vector<8x1xf32> to vector<8x8xf32>
      %45 = arith.mulf %44, %43 : vector<8x8xf32>
      %46 = arith.truncf %36 : vector<8x8xf32> to vector<8x8xbf16>
      %cst_19 = arith.constant dense<0.000000e+00> : vector<8x8xf32>
      %47 = tpu.matmul %46, %24, %cst_19 {dimension_numbers = #tpu.dot_dimension_numbers<[1], [0], [0], [1], [0, 0, 1, 1], [], []>} : vector<8x8xbf16>, vector<8x8xbf16>, vector<8x8xf32> -> vector<8x8xf32>
      %48 = arith.addf %45, %47 : vector<8x8xf32>
      %c0_20 = arith.constant 0 : index
      %c0_21 = arith.constant 0 : index
      %49 = vector.load %arg6[%c0_20, %c0_21] : memref<8x32xf32, #tpu.memory_space<vmem>>, vector<8x8xf32>
      tpu.vector_store %arg6[%c0_20, %c0_21], %48 {strides = array<i32>} : memref<8x32xf32, #tpu.memory_space<vmem>>, vector<8x8xf32>,
      %c0_22 = arith.constant 0 : index
      %c0_23 = arith.constant 0 : index
      %50 = vector.load %arg7[%c0_22, %c0_23] : memref<8x4xf32, #tpu.memory_space<vmem>>, vector<8x1xf32>
      tpu.vector_store %arg7[%c0_22, %c0_23], %31 {strides = array<i32>} : memref<8x4xf32, #tpu.memory_space<vmem>>, vector<8x1xf32>,
      %51 = vector.extract_strided_slice %18 {offsets = [0, 8], sizes = [8, 8], strides = [1, 1]} : vector<8x96xbf16> to vector<8x8xbf16>
      %cst_24 = arith.constant 3.535160e-01 : bf16
      %52 = vector.broadcast %cst_24 : bf16 to vector<8x8xbf16>
      %53 = arith.mulf %51, %52 : vector<8x8xbf16>
      %54 = vector.extract_strided_slice %19 {offsets = [0, 40], sizes = [8, 8], strides = [1, 1]} : vector<8x96xbf16> to vector<8x8xbf16>
      %55 = vector.extract_strided_slice %19 {offsets = [0, 72], sizes = [8, 8], strides = [1, 1]} : vector<8x96xbf16> to vector<8x8xbf16>
      %cst_25 = arith.constant dense<0.000000e+00> : vector<8x8xf32>
      %56 = tpu.matmul %53, %54, %cst_25 {dimension_numbers = #tpu.dot_dimension_numbers<[1], [1], [0], [0], [0, 0, 1, 0], [], []>} : vector<8x8xbf16>, vector<8x8xbf16>, vector<8x8xf32> -> vector<8x8xf32>
      %cst_26 = arith.constant -1.000000e+30 : f32
      %57 = vector.broadcast %cst_26 : f32 to vector<8x8xf32>
      %58 = arith.select %17, %56, %57 : vector<8x8xi1>, vector<8x8xf32>
      %c0_27 = arith.constant 0 : index
      %c1 = arith.constant 1 : index
      %59 = vector.load %arg7[%c0_27, %c1] : memref<8x4xf32, #tpu.memory_space<vmem>>, vector<8x1xf32>
      %cst_28 = arith.constant dense<0xFF800000> : vector<8xf32>
      %60 = vector.multi_reduction <maximumf>, %58, %cst_28 [1] : vector<8x8xf32> to vector<8xf32>
      %61 = vector.shape_cast %60 : vector<8xf32> to vector<8x1xf32>
      %62 = arith.maximumf %59, %61 : vector<8x1xf32>
      %63 = arith.subf %59, %62 : vector<8x1xf32>
      %64 = math.exp %63 : vector<8x1xf32>
      %65 = vector.broadcast %62 : vector<8x1xf32> to vector<8x8xf32>
      %66 = arith.subf %58, %65 : vector<8x8xf32>
      %67 = math.exp %66 : vector<8x8xf32>
      %c0_29 = arith.constant 0 : index
      %c1_30 = arith.constant 1 : index
      %68 = vector.load %arg8[%c0_29, %c1_30] : memref<8x4xf32, #tpu.memory_space<vmem>>, vector<8x1xf32>
      %69 = arith.mulf %64, %68 : vector<8x1xf32>
      %cst_31 = arith.constant dense<0.000000e+00> : vector<8xf32>
      %70 = vector.multi_reduction <add>, %67, %cst_31 [1] : vector<8x8xf32> to vector<8xf32>
      %71 = vector.shape_cast %70 : vector<8xf32> to vector<8x1xf32>
      %72 = arith.addf %69, %71 : vector<8x1xf32>
      %c0_32 = arith.constant 0 : index
      %c1_33 = arith.constant 1 : index
      %73 = vector.load %arg8[%c0_32, %c1_33] : memref<8x4xf32, #tpu.memory_space<vmem>>, vector<8x1xf32>
      tpu.vector_store %arg8[%c0_32, %c1_33], %72 {strides = array<i32>} : memref<8x4xf32, #tpu.memory_space<vmem>>, vector<8x1xf32>,
      %c0_34 = arith.constant 0 : index
      %c8 = arith.constant 8 : index
      %74 = vector.load %arg6[%c0_34, %c8] : memref<8x32xf32, #tpu.memory_space<vmem>>, vector<8x8xf32>
      %75 = vector.broadcast %64 : vector<8x1xf32> to vector<8x8xf32>
      %76 = arith.mulf %75, %74 : vector<8x8xf32>
      %77 = arith.truncf %67 : vector<8x8xf32> to vector<8x8xbf16>
      %cst_35 = arith.constant dense<0.000000e+00> : vector<8x8xf32>
      %78 = tpu.matmul %77, %55, %cst_35 {dimension_numbers = #tpu.dot_dimension_numbers<[1], [0], [0], [1], [0, 0, 1, 1], [], []>} : vector<8x8xbf16>, vector<8x8xbf16>, vector<8x8xf32> -> vector<8x8xf32>
      %79 = arith.addf %76, %78 : vector<8x8xf32>
      %c0_36 = arith.constant 0 : index
      %c8_37 = arith.constant 8 : index
      %80 = vector.load %arg6[%c0_36, %c8_37] : memref<8x32xf32, #tpu.memory_space<vmem>>, vector<8x8xf32>
      tpu.vector_store %arg6[%c0_36, %c8_37], %79 {strides = array<i32>} : memref<8x32xf32, #tpu.memory_space<vmem>>, vector<8x8xf32>,
      %c0_38 = arith.constant 0 : index
      %c1_39 = arith.constant 1 : index
      %81 = vector.load %arg7[%c0_38, %c1_39] : memref<8x4xf32, #tpu.memory_space<vmem>>, vector<8x1xf32>
      tpu.vector_store %arg7[%c0_38, %c1_39], %62 {strides = array<i32>} : memref<8x4xf32, #tpu.memory_space<vmem>>, vector<8x1xf32>,
      %82 = vector.extract_strided_slice %18 {offsets = [0, 16], sizes = [8, 8], strides = [1, 1]} : vector<8x96xbf16> to vector<8x8xbf16>
      %cst_40 = arith.constant 3.535160e-01 : bf16
      %83 = vector.broadcast %cst_40 : bf16 to vector<8x8xbf16>
      %84 = arith.mulf %82, %83 : vector<8x8xbf16>
      %85 = vector.extract_strided_slice %19 {offsets = [0, 48], sizes = [8, 8], strides = [1, 1]} : vector<8x96xbf16> to vector<8x8xbf16>
      %86 = vector.extract_strided_slice %19 {offsets = [0, 80], sizes = [8, 8], strides = [1, 1]} : vector<8x96xbf16> to vector<8x8xbf16>
      %cst_41 = arith.constant dense<0.000000e+00> : vector<8x8xf32>
      %87 = tpu.matmul %84, %85, %cst_41 {dimension_numbers = #tpu.dot_dimension_numbers<[1], [1], [0], [0], [0, 0, 1, 0], [], []>} : vector<8x8xbf16>, vector<8x8xbf16>, vector<8x8xf32> -> vector<8x8xf32>
      %cst_42 = arith.constant -1.000000e+30 : f32
      %88 = vector.broadcast %cst_42 : f32 to vector<8x8xf32>
      %89 = arith.select %17, %87, %88 : vector<8x8xi1>, vector<8x8xf32>
      %c0_43 = arith.constant 0 : index
      %c2 = arith.constant 2 : index
      %90 = vector.load %arg7[%c0_43, %c2] : memref<8x4xf32, #tpu.memory_space<vmem>>, vector<8x1xf32>
      %cst_44 = arith.constant dense<0xFF800000> : vector<8xf32>
      %91 = vector.multi_reduction <maximumf>, %89, %cst_44 [1] : vector<8x8xf32> to vector<8xf32>
      %92 = vector.shape_cast %91 : vector<8xf32> to vector<8x1xf32>
      %93 = arith.maximumf %90, %92 : vector<8x1xf32>
      %94 = arith.subf %90, %93 : vector<8x1xf32>
      %95 = math.exp %94 : vector<8x1xf32>
      %96 = vector.broadcast %93 : vector<8x1xf32> to vector<8x8xf32>
      %97 = arith.subf %89, %96 : vector<8x8xf32>
      %98 = math.exp %97 : vector<8x8xf32>
      %c0_45 = arith.constant 0 : index
      %c2_46 = arith.constant 2 : index
      %99 = vector.load %arg8[%c0_45, %c2_46] : memref<8x4xf32, #tpu.memory_space<vmem>>, vector<8x1xf32>
      %100 = arith.mulf %95, %99 : vector<8x1xf32>
      %cst_47 = arith.constant dense<0.000000e+00> : vector<8xf32>
      %101 = vector.multi_reduction <add>, %98, %cst_47 [1] : vector<8x8xf32> to vector<8xf32>
      %102 = vector.shape_cast %101 : vector<8xf32> to vector<8x1xf32>
      %103 = arith.addf %100, %102 : vector<8x1xf32>
      %c0_48 = arith.constant 0 : index
      %c2_49 = arith.constant 2 : index
      %104 = vector.load %arg8[%c0_48, %c2_49] : memref<8x4xf32, #tpu.memory_space<vmem>>, vector<8x1xf32>
      tpu.vector_store %arg8[%c0_48, %c2_49], %103 {strides = array<i32>} : memref<8x4xf32, #tpu.memory_space<vmem>>, vector<8x1xf32>,
      %c0_50 = arith.constant 0 : index
      %c16 = arith.constant 16 : index
      %105 = vector.load %arg6[%c0_50, %c16] : memref<8x32xf32, #tpu.memory_space<vmem>>, vector<8x8xf32>
      %106 = vector.broadcast %95 : vector<8x1xf32> to vector<8x8xf32>
      %107 = arith.mulf %106, %105 : vector<8x8xf32>
      %108 = arith.truncf %98 : vector<8x8xf32> to vector<8x8xbf16>
      %cst_51 = arith.constant dense<0.000000e+00> : vector<8x8xf32>
      %109 = tpu.matmul %108, %86, %cst_51 {dimension_numbers = #tpu.dot_dimension_numbers<[1], [0], [0], [1], [0, 0, 1, 1], [], []>} : vector<8x8xbf16>, vector<8x8xbf16>, vector<8x8xf32> -> vector<8x8xf32>
      %110 = arith.addf %107, %109 : vector<8x8xf32>
      %c0_52 = arith.constant 0 : index
      %c16_53 = arith.constant 16 : index
      %111 = vector.load %arg6[%c0_52, %c16_53] : memref<8x32xf32, #tpu.memory_space<vmem>>, vector<8x8xf32>
      tpu.vector_store %arg6[%c0_52, %c16_53], %110 {strides = array<i32>} : memref<8x32xf32, #tpu.memory_space<vmem>>, vector<8x8xf32>,
      %c0_54 = arith.constant 0 : index
      %c2_55 = arith.constant 2 : index
      %112 = vector.load %arg7[%c0_54, %c2_55] : memref<8x4xf32, #tpu.memory_space<vmem>>, vector<8x1xf32>
      tpu.vector_store %arg7[%c0_54, %c2_55], %93 {strides = array<i32>} : memref<8x4xf32, #tpu.memory_space<vmem>>, vector<8x1xf32>,
      %113 = vector.extract_strided_slice %18 {offsets = [0, 24], sizes = [8, 8], strides = [1, 1]} : vector<8x96xbf16> to vector<8x8xbf16>
      %cst_56 = arith.constant 3.535160e-01 : bf16
      %114 = vector.broadcast %cst_56 : bf16 to vector<8x8xbf16>
      %115 = arith.mulf %113, %114 : vector<8x8xbf16>
      %116 = vector.extract_strided_slice %19 {offsets = [0, 56], sizes = [8, 8], strides = [1, 1]} : vector<8x96xbf16> to vector<8x8xbf16>
      %117 = vector.extract_strided_slice %19 {offsets = [0, 88], sizes = [8, 8], strides = [1, 1]} : vector<8x96xbf16> to vector<8x8xbf16>
      %cst_57 = arith.constant dense<0.000000e+00> : vector<8x8xf32>
      %118 = tpu.matmul %115, %116, %cst_57 {dimension_numbers = #tpu.dot_dimension_numbers<[1], [1], [0], [0], [0, 0, 1, 0], [], []>} : vector<8x8xbf16>, vector<8x8xbf16>, vector<8x8xf32> -> vector<8x8xf32>
      %cst_58 = arith.constant -1.000000e+30 : f32
      %119 = vector.broadcast %cst_58 : f32 to vector<8x8xf32>
      %120 = arith.select %17, %118, %119 : vector<8x8xi1>, vector<8x8xf32>
      %c0_59 = arith.constant 0 : index
      %c3 = arith.constant 3 : index
      %121 = vector.load %arg7[%c0_59, %c3] : memref<8x4xf32, #tpu.memory_space<vmem>>, vector<8x1xf32>
      %cst_60 = arith.constant dense<0xFF800000> : vector<8xf32>
      %122 = vector.multi_reduction <maximumf>, %120, %cst_60 [1] : vector<8x8xf32> to vector<8xf32>
      %123 = vector.shape_cast %122 : vector<8xf32> to vector<8x1xf32>
      %124 = arith.maximumf %121, %123 : vector<8x1xf32>
      %125 = arith.subf %121, %124 : vector<8x1xf32>
      %126 = math.exp %125 : vector<8x1xf32>
      %127 = vector.broadcast %124 : vector<8x1xf32> to vector<8x8xf32>
      %128 = arith.subf %120, %127 : vector<8x8xf32>
      %129 = math.exp %128 : vector<8x8xf32>
      %c0_61 = arith.constant 0 : index
      %c3_62 = arith.constant 3 : index
      %130 = vector.load %arg8[%c0_61, %c3_62] : memref<8x4xf32, #tpu.memory_space<vmem>>, vector<8x1xf32>
      %131 = arith.mulf %126, %130 : vector<8x1xf32>
      %cst_63 = arith.constant dense<0.000000e+00> : vector<8xf32>
      %132 = vector.multi_reduction <add>, %129, %cst_63 [1] : vector<8x8xf32> to vector<8xf32>
      %133 = vector.shape_cast %132 : vector<8xf32> to vector<8x1xf32>
      %134 = arith.addf %131, %133 : vector<8x1xf32>
      %c0_64 = arith.constant 0 : index
      %c3_65 = arith.constant 3 : index
      %135 = vector.load %arg8[%c0_64, %c3_65] : memref<8x4xf32, #tpu.memory_space<vmem>>, vector<8x1xf32>
      tpu.vector_store %arg8[%c0_64, %c3_65], %134 {strides = array<i32>} : memref<8x4xf32, #tpu.memory_space<vmem>>, vector<8x1xf32>,
      %c0_66 = arith.constant 0 : index
      %c24 = arith.constant 24 : index
      %136 = vector.load %arg6[%c0_66, %c24] : memref<8x32xf32, #tpu.memory_space<vmem>>, vector<8x8xf32>
      %137 = vector.broadcast %126 : vector<8x1xf32> to vector<8x8xf32>
      %138 = arith.mulf %137, %136 : vector<8x8xf32>
      %139 = arith.truncf %129 : vector<8x8xf32> to vector<8x8xbf16>
      %cst_67 = arith.constant dense<0.000000e+00> : vector<8x8xf32>
      %140 = tpu.matmul %139, %117, %cst_67 {dimension_numbers = #tpu.dot_dimension_numbers<[1], [0], [0], [1], [0, 0, 1, 1], [], []>} : vector<8x8xbf16>, vector<8x8xbf16>, vector<8x8xf32> -> vector<8x8xf32>
      %141 = arith.addf %138, %140 : vector<8x8xf32>
      %c0_68 = arith.constant 0 : index
      %c24_69 = arith.constant 24 : index
      %142 = vector.load %arg6[%c0_68, %c24_69] : memref<8x32xf32, #tpu.memory_space<vmem>>, vector<8x8xf32>
      tpu.vector_store %arg6[%c0_68, %c24_69], %141 {strides = array<i32>} : memref<8x32xf32, #tpu.memory_space<vmem>>, vector<8x8xf32>,
      %c0_70 = arith.constant 0 : index
      %c3_71 = arith.constant 3 : index
      %143 = vector.load %arg7[%c0_70, %c3_71] : memref<8x4xf32, #tpu.memory_space<vmem>>, vector<8x1xf32>
      tpu.vector_store %arg7[%c0_70, %c3_71], %124 {strides = array<i32>} : memref<8x4xf32, #tpu.memory_space<vmem>>, vector<8x1xf32>,
    } else {
    }
    %6 = arith.cmpi eq, %arg2, %arg1 : i32
    %7 = arith.extui %6 : i1 to i32
    %c0_i32_2 = arith.constant 0 : i32
    %8 = arith.cmpi ne, %7, %c0_i32_2 : i32
    scf.if %8 {
      %c0 = arith.constant 0 : index
      %c0_3 = arith.constant 0 : index
      %9 = vector.load %arg8[%c0, %c0_3] : memref<8x4xf32, #tpu.memory_space<vmem>>, vector<8x1xf32>
      %10 = tpu.reciprocal %9 {approx = true} : vector<8x1xf32> -> vector<8x1xf32>
      %c0_4 = arith.constant 0 : index
      %c0_5 = arith.constant 0 : index
      %11 = vector.load %arg6[%c0_4, %c0_5] : memref<8x32xf32, #tpu.memory_space<vmem>>, vector<8x8xf32>
      %12 = vector.broadcast %10 : vector<8x1xf32> to vector<8x8xf32>
      %13 = arith.mulf %11, %12 : vector<8x8xf32>
      %c0_6 = arith.constant 0 : index
      %c0_7 = arith.constant 0 : index
      %14 = vector.load %arg6[%c0_6, %c0_7] : memref<8x32xf32, #tpu.memory_space<vmem>>, vector<8x8xf32>
      tpu.vector_store %arg6[%c0_6, %c0_7], %13 {strides = array<i32>} : memref<8x32xf32, #tpu.memory_space<vmem>>, vector<8x8xf32>,
      %c0_8 = arith.constant 0 : index
      %c1 = arith.constant 1 : index
      %15 = vector.load %arg8[%c0_8, %c1] : memref<8x4xf32, #tpu.memory_space<vmem>>, vector<8x1xf32>
      %16 = tpu.reciprocal %15 {approx = true} : vector<8x1xf32> -> vector<8x1xf32>
      %c0_9 = arith.constant 0 : index
      %c8 = arith.constant 8 : index
      %17 = vector.load %arg6[%c0_9, %c8] : memref<8x32xf32, #tpu.memory_space<vmem>>, vector<8x8xf32>
      %18 = vector.broadcast %16 : vector<8x1xf32> to vector<8x8xf32>
      %19 = arith.mulf %17, %18 : vector<8x8xf32>
      %c0_10 = arith.constant 0 : index
      %c8_11 = arith.constant 8 : index
      %20 = vector.load %arg6[%c0_10, %c8_11] : memref<8x32xf32, #tpu.memory_space<vmem>>, vector<8x8xf32>
      tpu.vector_store %arg6[%c0_10, %c8_11], %19 {strides = array<i32>} : memref<8x32xf32, #tpu.memory_space<vmem>>, vector<8x8xf32>,
      %c0_12 = arith.constant 0 : index
      %c2 = arith.constant 2 : index
      %21 = vector.load %arg8[%c0_12, %c2] : memref<8x4xf32, #tpu.memory_space<vmem>>, vector<8x1xf32>
      %22 = tpu.reciprocal %21 {approx = true} : vector<8x1xf32> -> vector<8x1xf32>
      %c0_13 = arith.constant 0 : index
      %c16 = arith.constant 16 : index
      %23 = vector.load %arg6[%c0_13, %c16] : memref<8x32xf32, #tpu.memory_space<vmem>>, vector<8x8xf32>
      %24 = vector.broadcast %22 : vector<8x1xf32> to vector<8x8xf32>
      %25 = arith.mulf %23, %24 : vector<8x8xf32>
      %c0_14 = arith.constant 0 : index
      %c16_15 = arith.constant 16 : index
      %26 = vector.load %arg6[%c0_14, %c16_15] : memref<8x32xf32, #tpu.memory_space<vmem>>, vector<8x8xf32>
      tpu.vector_store %arg6[%c0_14, %c16_15], %25 {strides = array<i32>} : memref<8x32xf32, #tpu.memory_space<vmem>>, vector<8x8xf32>,
      %c0_16 = arith.constant 0 : index
      %c3 = arith.constant 3 : index
      %27 = vector.load %arg8[%c0_16, %c3] : memref<8x4xf32, #tpu.memory_space<vmem>>, vector<8x1xf32>
      %28 = tpu.reciprocal %27 {approx = true} : vector<8x1xf32> -> vector<8x1xf32>
      %c0_17 = arith.constant 0 : index
      %c24 = arith.constant 24 : index
      %29 = vector.load %arg6[%c0_17, %c24] : memref<8x32xf32, #tpu.memory_space<vmem>>, vector<8x8xf32>
      %30 = vector.broadcast %28 : vector<8x1xf32> to vector<8x8xf32>
      %31 = arith.mulf %29, %30 : vector<8x8xf32>
      %c0_18 = arith.constant 0 : index
      %c24_19 = arith.constant 24 : index
      %32 = vector.load %arg6[%c0_18, %c24_19] : memref<8x32xf32, #tpu.memory_space<vmem>>, vector<8x8xf32>
      tpu.vector_store %arg6[%c0_18, %c24_19], %31 {strides = array<i32>} : memref<8x32xf32, #tpu.memory_space<vmem>>, vector<8x8xf32>,
      %c0_20 = arith.constant 0 : index
      %c0_21 = arith.constant 0 : index
      %33 = vector.load %arg6[%c0_20, %c0_21] : memref<8x32xf32, #tpu.memory_space<vmem>>, vector<8x32xf32>
      %34 = arith.truncf %33 : vector<8x32xf32> to vector<8x32xbf16>
      %c0_22 = arith.constant 0 : index
      %c0_23 = arith.constant 0 : index
      %35 = vector.load %arg5[%c0_22, %c0_23] : memref<8x32xbf16, #tpu.memory_space<vmem>>, vector<8x32xbf16>
      tpu.vector_store %arg5[%c0_22, %c0_23], %34 {strides = array<i32>} : memref<8x32xbf16, #tpu.memory_space<vmem>>, vector<8x32xbf16>,
    } else {
    }
    return
  }
  func.func @transform_0(%arg0: i32, %arg1: i32, %arg2: i32) -> (i32, i32) {
    %c1_i32 = arith.constant 1 : i32
    %0 = arith.muli %arg0, %c1_i32 : i32
    %1 = arith.addi %0, %arg1 : i32
    %c0_i32 = arith.constant 0 : i32
    %c0_i32_0 = arith.constant 0 : i32
    return %1, %c0_i32 : i32, i32
  }
  func.func @transform_1(%arg0: i32, %arg1: i32, %arg2: i32) -> (i32, i32) {
    %c1_i32 = arith.constant 1 : i32
    %0 = arith.muli %arg0, %c1_i32 : i32
    %1 = arith.minsi %arg2, %arg1 : i32
    %2 = arith.addi %0, %1 : i32
    %c0_i32 = arith.constant 0 : i32
    %c0_i32_0 = arith.constant 0 : i32
    return %2, %c0_i32 : i32, i32
  }
  func.func @transform_2(%arg0: i32, %arg1: i32, %arg2: i32) -> (i32, i32) {
    %c1_i32 = arith.constant 1 : i32
    %0 = arith.muli %arg0, %c1_i32 : i32
    %1 = arith.addi %0, %arg1 : i32
    %c0_i32 = arith.constant 0 : i32
    %c0_i32_0 = arith.constant 0 : i32
    return %1, %c0_i32 : i32, i32
  }
}

module attributes {stable_mosaic.version = 11 : i64} {
  func.func @_fused_matmul_kernel(%arg0: i32, %arg1: i32, %arg2: memref<16x128xbf16, #tpu.memory_space<vmem>>, %arg3: memref<128x32xbf16, #tpu.memory_space<vmem>>, %arg4: memref<1x32xf32, #tpu.memory_space<vmem>>, %arg5: memref<16x32xbf16, #tpu.memory_space<vmem>>, %arg6: memref<16x32xbf16, #tpu.memory_space<vmem>>) attributes {dimension_semantics = [#tpu.dimension_semantics<parallel>, #tpu.dimension_semantics<parallel>], iteration_bounds = array<i64: 1, 1>, scalar_prefetch = 0 : i64, scratch_operands = 0 : i64, tpu.core_type = #tpu.core_type<tc>, window_params = [{transform_indices = @transform_0, window_bounds = array<i64: 16, 128>}, {transform_indices = @transform_1, window_bounds = array<i64: 128, 32>}, {transform_indices = @transform_2, window_bounds = array<i64: 1, 32>}, {transform_indices = @transform_3, window_bounds = array<i64: 16, 32>}, {transform_indices = @transform_4, window_bounds = array<i64: 16, 32>}]} {
    %c0 = arith.constant 0 : index
    %c0_0 = arith.constant 0 : index
    %0 = vector.load %arg2[%c0, %c0_0] : memref<16x128xbf16, #tpu.memory_space<vmem>>, vector<16x128xbf16>
    %c0_1 = arith.constant 0 : index
    %c0_2 = arith.constant 0 : index
    %1 = vector.load %arg3[%c0_1, %c0_2] : memref<128x32xbf16, #tpu.memory_space<vmem>>, vector<128x32xbf16>
    %cst = arith.constant dense<0.000000e+00> : vector<16x32xf32>
    %2 = tpu.matmul %0, %1, %cst {dimension_numbers = #tpu.dot_dimension_numbers<[1], [0], [0], [1], [0, 0, 1, 1], [], []>} : vector<16x128xbf16>, vector<128x32xbf16>, vector<16x32xf32> -> vector<16x32xf32>
    %c0_3 = arith.constant 0 : index
    %c0_4 = arith.constant 0 : index
    %3 = vector.load %arg4[%c0_3, %c0_4] : memref<1x32xf32, #tpu.memory_space<vmem>>, vector<1x32xf32>
    %4 = vector.broadcast %3 : vector<1x32xf32> to vector<16x32xf32>
    %5 = arith.addf %2, %4 : vector<16x32xf32>
    %c0_5 = arith.constant 0 : index
    %c0_6 = arith.constant 0 : index
    %6 = vector.load %arg5[%c0_5, %c0_6] : memref<16x32xbf16, #tpu.memory_space<vmem>>, vector<16x32xbf16>
    %7 = arith.extf %6 : vector<16x32xbf16> to vector<16x32xf32>
    %8 = arith.addf %5, %7 : vector<16x32xf32>
    %9 = arith.truncf %8 : vector<16x32xf32> to vector<16x32xbf16>
    %c0_7 = arith.constant 0 : index
    %c0_8 = arith.constant 0 : index
    %10 = vector.load %arg6[%c0_7, %c0_8] : memref<16x32xbf16, #tpu.memory_space<vmem>>, vector<16x32xbf16>
    tpu.vector_store %arg6[%c0_7, %c0_8], %9 {strides = array<i32>} : memref<16x32xbf16, #tpu.memory_space<vmem>>, vector<16x32xbf16>,
    return
  }
  func.func @transform_0(%arg0: i32, %arg1: i32) -> (i32, i32) {
    %c0_i32 = arith.constant 0 : i32
    %c0_i32_0 = arith.constant 0 : i32
    return %arg0, %c0_i32 : i32, i32
  }
  func.func @transform_1(%arg0: i32, %arg1: i32) -> (i32, i32) {
    %c0_i32 = arith.constant 0 : i32
    %c0_i32_0 = arith.constant 0 : i32
    return %c0_i32, %arg1 : i32, i32
  }
  func.func @transform_2(%arg0: i32, %arg1: i32) -> (i32, i32) {
    %c0_i32 = arith.constant 0 : i32
    %c0_i32_0 = arith.constant 0 : i32
    return %c0_i32, %arg1 : i32, i32
  }
  func.func @transform_3(%arg0: i32, %arg1: i32) -> (i32, i32) {
    %c0_i32 = arith.constant 0 : i32
    return %arg0, %arg1 : i32, i32
  }
  func.func @transform_4(%arg0: i32, %arg1: i32) -> (i32, i32) {
    %c0_i32 = arith.constant 0 : i32
    return %arg0, %arg1 : i32, i32
  }
}

module attributes {stable_mosaic.version = 11 : i64} {
  func.func @_fused_matmul_kernel(%arg0: i32, %arg1: i32, %arg2: memref<16x32xbf16, #tpu.memory_space<vmem>>, %arg3: memref<1x32xf32, #tpu.memory_space<vmem>>, %arg4: memref<1x32xf32, #tpu.memory_space<vmem>>, %arg5: memref<32x128xbf16, #tpu.memory_space<vmem>>, %arg6: memref<16x128xbf16, #tpu.memory_space<vmem>>, %arg7: memref<16x32xbf16, #tpu.memory_space<vmem>>) attributes {dimension_semantics = [#tpu.dimension_semantics<parallel>, #tpu.dimension_semantics<arbitrary>], iteration_bounds = array<i64: 1, 1>, scalar_prefetch = 0 : i64, scratch_operands = 1 : i64, tpu.core_type = #tpu.core_type<tc>, window_params = [{transform_indices = @transform_0, window_bounds = array<i64: 16, 32>}, {pipeline_mode = #tpu.pipeline_mode<synchronous>, transform_indices = @transform_1, window_bounds = array<i64: 1, 32>}, {pipeline_mode = #tpu.pipeline_mode<synchronous>, transform_indices = @transform_2, window_bounds = array<i64: 1, 32>}, {transform_indices = @transform_3, window_bounds = array<i64: 32, 128>}, {transform_indices = @transform_4, window_bounds = array<i64: 16, 128>}]} {
    %c0_i32 = arith.constant 0 : i32
    %0 = arith.cmpi eq, %arg1, %c0_i32 : i32
    %1 = arith.extui %0 : i1 to i32
    %c0_i32_0 = arith.constant 0 : i32
    %2 = arith.cmpi ne, %1, %c0_i32_0 : i32
    scf.if %2 {
      %c0_6 = arith.constant 0 : index
      %c0_7 = arith.constant 0 : index
      %8 = vector.load %arg2[%c0_6, %c0_7] : memref<16x32xbf16, #tpu.memory_space<vmem>>, vector<16x32xbf16>
      %9 = arith.extf %8 : vector<16x32xbf16> to vector<16x32xf32>
      %cst_8 = arith.constant dense<0.000000e+00> : vector<16xf32>
      %10 = vector.multi_reduction <add>, %9, %cst_8 [1] : vector<16x32xf32> to vector<16xf32>
      %11 = vector.shape_cast %10 : vector<16xf32> to vector<16x1xf32>
      %cst_9 = arith.constant 3.200000e+01 : f32
      %12 = vector.broadcast %cst_9 : f32 to vector<16x1xf32>
      %13 = arith.divf %11, %12 : vector<16x1xf32>
      %14 = vector.broadcast %13 : vector<16x1xf32> to vector<16x32xf32>
      %15 = arith.subf %9, %14 : vector<16x32xf32>
      %16 = arith.mulf %15, %15 : vector<16x32xf32>
      %cst_10 = arith.constant dense<0.000000e+00> : vector<16xf32>
      %17 = vector.multi_reduction <add>, %16, %cst_10 [1] : vector<16x32xf32> to vector<16xf32>
      %18 = vector.shape_cast %17 : vector<16xf32> to vector<16x1xf32>
      %cst_11 = arith.constant 3.200000e+01 : f32
      %19 = vector.broadcast %cst_11 : f32 to vector<16x1xf32>
      %20 = arith.divf %18, %19 : vector<16x1xf32>
      %21 = vector.broadcast %13 : vector<16x1xf32> to vector<16x32xf32>
      %22 = arith.subf %9, %21 : vector<16x32xf32>
      %cst_12 = arith.constant 9.99999974E-6 : f32
      %23 = vector.broadcast %cst_12 : f32 to vector<16x1xf32>
      %24 = arith.addf %20, %23 : vector<16x1xf32>
      %25 = math.rsqrt %24 : vector<16x1xf32>
      %26 = vector.broadcast %25 : vector<16x1xf32> to vector<16x32xf32>
      %27 = arith.mulf %22, %26 : vector<16x32xf32>
      %c0_13 = arith.constant 0 : index
      %c0_14 = arith.constant 0 : index
      %28 = vector.load %arg3[%c0_13, %c0_14] : memref<1x32xf32, #tpu.memory_space<vmem>>, vector<1x32xf32>
      %29 = vector.broadcast %28 : vector<1x32xf32> to vector<16x32xf32>
      %30 = arith.mulf %27, %29 : vector<16x32xf32>
      %c0_15 = arith.constant 0 : index
      %c0_16 = arith.constant 0 : index
      %31 = vector.load %arg4[%c0_15, %c0_16] : memref<1x32xf32, #tpu.memory_space<vmem>>, vector<1x32xf32>
      %32 = vector.broadcast %31 : vector<1x32xf32> to vector<16x32xf32>
      %33 = arith.addf %30, %32 : vector<16x32xf32>
      %34 = arith.truncf %33 : vector<16x32xf32> to vector<16x32xbf16>
      %c0_17 = arith.constant 0 : index
      %c0_18 = arith.constant 0 : index
      %35 = vector.load %arg7[%c0_17, %c0_18] : memref<16x32xbf16, #tpu.memory_space<vmem>>, vector<16x32xbf16>
      tpu.vector_store %arg7[%c0_17, %c0_18], %34 {strides = array<i32>} : memref<16x32xbf16, #tpu.memory_space<vmem>>, vector<16x32xbf16>,
    } else {
    }
    %c0 = arith.constant 0 : index
    %c0_1 = arith.constant 0 : index
    %3 = vector.load %arg7[%c0, %c0_1] : memref<16x32xbf16, #tpu.memory_space<vmem>>, vector<16x32xbf16>
    %c0_2 = arith.constant 0 : index
    %c0_3 = arith.constant 0 : index
    %4 = vector.load %arg5[%c0_2, %c0_3] : memref<32x128xbf16, #tpu.memory_space<vmem>>, vector<32x128xbf16>
    %cst = arith.constant dense<0.000000e+00> : vector<16x128xf32>
    %5 = tpu.matmul %3, %4, %cst {dimension_numbers = #tpu.dot_dimension_numbers<[1], [0], [0], [1], [0, 0, 1, 1], [], []>} : vector<16x32xbf16>, vector<32x128xbf16>, vector<16x128xf32> -> vector<16x128xf32>
    %6 = arith.truncf %5 : vector<16x128xf32> to vector<16x128xbf16>
    %c0_4 = arith.constant 0 : index
    %c0_5 = arith.constant 0 : index
    %7 = vector.load %arg6[%c0_4, %c0_5] : memref<16x128xbf16, #tpu.memory_space<vmem>>, vector<16x128xbf16>
    tpu.vector_store %arg6[%c0_4, %c0_5], %6 {strides = array<i32>} : memref<16x128xbf16, #tpu.memory_space<vmem>>, vector<16x128xbf16>,
    return
  }
  func.func @transform_0(%arg0: i32, %arg1: i32) -> (i32, i32) {
    %c0_i32 = arith.constant 0 : i32
    %c0_i32_0 = arith.constant 0 : i32
    return %arg0, %c0_i32 : i32, i32
  }
  func.func @transform_1(%arg0: i32, %arg1: i32) -> (i32, i32) {
    %c0_i32 = arith.constant 0 : i32
    %c0_i32_0 = arith.constant 0 : i32
    %c0_i32_1 = arith.constant 0 : i32
    return %c0_i32, %c0_i32_0 : i32, i32
  }
  func.func @transform_2(%arg0: i32, %arg1: i32) -> (i32, i32) {
    %c0_i32 = arith.constant 0 : i32
    %c0_i32_0 = arith.constant 0 : i32
    %c0_i32_1 = arith.constant 0 : i32
    return %c0_i32, %c0_i32_0 : i32, i32
  }
  func.func @transform_3(%arg0: i32, %arg1: i32) -> (i32, i32) {
    %c0_i32 = arith.constant 0 : i32
    %c0_i32_0 = arith.constant 0 : i32
    return %c0_i32, %arg1 : i32, i32
  }
  func.func @transform_4(%arg0: i32, %arg1: i32) -> (i32, i32) {
    %c0_i32 = arith.constant 0 : i32
    return %arg0, %arg1 : i32, i32
  }
}

</mosaic_0001>

<bundles_post_ra>
// kernel: gpt2_forward.11
= control target key start
LH: loop header
LB: loop body
LE: loop exit
PB: predicated region body
PF: predicated region fallthrough
CT: control target
= control target key end

     0   :  { %vm29_vm0 = vcmask 261120   ;;  %v215_v16 = vmov 0.0   ;;  %vm216_vm1 = vmmov 0   ;;  %vm83_vm2 = vcmask 257024   ;;  %s276_s0 = inlined_call_operand.vmem [shape: bf16[16,32], index: 0, kind: input, shape index: {}]   ;;  %s277_s3 = inlined_call_operand.vmem [shape: bf16[32,96], index: 3, kind: input, shape index: {}]   ;;  %s278_s1 = inlined_call_operand.vmem [shape: f32[1,32], index: 1, kind: input, shape index: {}]   ;;  %s279_s2 = inlined_call_operand.vmem [shape: f32[1,32], index: 2, kind: input, shape index: {}]   ;;  %s280_s4 = inlined_call_operand.vmem [shape: f32[1,96], index: 4, kind: input, shape index: {}]   ;;  %s281_s5 = inlined_call_operand.vmem [shape: bf16[16,96], index: 5, kind: output, shape index: {}]  }
   0x1   :  { %v192_v0 = vld [vmem:[%s276_s0] sm:$0xff]   ;;  %v208_v15 = vld [vmem:[%s277_s3 + $0x8] sm:$0xff]   ;;  %198 = vmatprep.subr.bf16.mxu0 %v215_v16  ;;  %202 = vmatprep.mubr.msk.bf16.mxu0 %vm216_vm1, %v215_v16  ;;  %vm169_vm3 = vcmask 781312  }
   0x2   :  { %v193_v1 = vunpack.c.l.bf16 %v192_v0  ;;  %v194_v2 = vunpack.c.h.bf16 %v192_v0  ;;  %199 = vmatpush3.bf16.msra.mxu0 %v208_v15  ;;  %v209_v17 = vld [vmem:[%s277_s3] sm:$0xff]  }
   0x3   :  { %200 = vmatprep.subr.bf16.mxu0 %v215_v16  ;;  %v176_v25 = vld [vmem:[%s278_s1] ss:$0 sm:$0xff] }
   0x4   :  { %v30_v3 = vsel %vm29_vm0, %v193_v1, 0.0  ;;  %v33_v4 = vsel %vm29_vm0, %v194_v2, 0.0  ;;  %v177_v27 = vld [vmem:[%s279_s2] ss:$0 sm:$0xff] }
   0x5   :  { %31 = vadd.xlane.f32.xlu0 %v30_v3  ;;  %v180_v37 = vld [vmem:[%s280_s4] ss:$0 sm:$0xff] }
   0x6   :  { %201 = vmatpush3.bf16.msra.mxu0 %v209_v17 }
   0x9   :  { %34 = vadd.xlane.f32.xlu0 %v33_v4 }
  0x8e   :  { %v32_v5 = vpop.xlane.xlu0 %31 }
  0x8f   :  { %v37_v6 = vmul.f32 0.03125, %v32_v5 }
  0x91   :  { %v39_v7 = vsub.f32 %v193_v1, %v37_v6 }
  0x92   :  { %v35_v8 = vpop.xlane.xlu0 %34 }
  0x93   :  { %v38_v9 = vmul.f32 0.03125, %v35_v8  ;;  %v41_v10 = vmul.f32 %v39_v7, %v39_v7 }
  0x95   :  { %v40_v11 = vsub.f32 %v194_v2, %v38_v9  ;;  %v43_v12 = vsel %vm29_vm0, %v41_v10, 0.0 }
  0x96   :  { %44 = vadd.xlane.f32.xlu1 %v43_v12 }
  0x97   :  { %v42_v13 = vmul.f32 %v40_v11, %v40_v11 }
  0x99   :  { %v46_v14 = vsel %vm29_vm0, %v42_v13, 0.0 }
  0x9a   :  { %47 = vadd.xlane.f32.xlu1 %v46_v14 }
 0x11f   :  { %v45_v18 = vpop.xlane.xlu1 %44 }
 0x120   :  { %v49_v19 = vmul.f32 0.03125, %v45_v18 }
 0x122   :  { %v51_v20 = vadd.f32 1e-05, %v49_v19 }
 0x123   :  { %v48_v21 = vpop.xlane.xlu1 %47 }
 0x124   :  { %211 = vrsqrt.f32 %v51_v20  ;;  %v50_v22 = vmul.f32 0.03125, %v48_v21 }
 0x126   :  { %v52_v23 = vadd.f32 1e-05, %v50_v22 }
 0x128   :  { %213 = vrsqrt.f32 %v52_v23 }
 0x131   :  { %v212_v24 = vpop.eup %211 }
 0x132   :  { %v55_v26 = vmul.f32 %v212_v24, %v39_v7 }
 0x134   :  { %v64_v28 = vmul.f32 %v176_v25, %v55_v26 }
 0x135   :  { %v214_v29 = vpop.eup %213 }
 0x136   :  { %v73_v30 = vadd.f32 %v177_v27, %v64_v28  ;;  %v56_v31 = vmul.f32 %v214_v29, %v40_v11 }
 0x138   :  { %v187_v32 = vpack.c.bf16 %v73_v30, %v73_v30  ;;  %v65_v33 = vmul.f32 %v176_v25, %v56_v31 }
 0x13a   :  { %84 = vst.msk [vmem:[#allocation2] sm:$0xf] %vm83_vm2, %v187_v32  ;;  %v74_v34 = vadd.f32 %v177_v27, %v65_v33 }
 0x13c   :  { %v188_v35 = vpack.c.bf16 %v74_v34, %v74_v34 }
 0x13e   :  { %85 = vst.msk [vmem:[#allocation2 + $0x4] sm:$0xf] %vm83_vm2, %v188_v35 }
 0x145   :  { %v210_v36 = vld [vmem:[#allocation2] sm:$0xff]  }
 0x146   :  { %203 = vmatmul.mubr.msk.bf16.vlgmr.msra.gmra.mxu0 %vm29_vm0, %v210_v36 }
 0x206   :  { %v154_v38 = vpop.f32.mrf.mxu0 }
 0x207   :  { %v155_v39 = vadd.f32 %v180_v37, %v154_v38 }
 0x208   :  { %v204_v40 = vpop.f32.mrf.mxu0 }
 0x209   :  { %v189_v41 = vpack.c.bf16 %v155_v39, %v155_v39 }
 0x20a   :  { %v157_v42 = vpop.f32.mrf.mxu0 }
 0x20b   :  { %170 = vst.msk [vmem:[%s281_s5] sm:$0xf] %vm169_vm3, %v189_v41  ;;  %v158_v43 = vadd.f32 %v180_v37, %v157_v42 }
 0x20c   :  { %v205_v44 = vpop.f32.mrf.mxu0 }
 0x20d   :  { %v190_v45 = vpack.c.bf16 %v158_v43, %v158_v43 }
 0x20f   :  { %171 = vst.msk [vmem:[%s281_s5 + $0x4] sm:$0xf] %vm169_vm3, %v190_v45 }

// kernel: gpt2_forward.14
= control target key start
LH: loop header
LB: loop body
LE: loop exit
PB: predicated region body
PF: predicated region fallthrough
CT: control target
= control target key end

     0   :  { %vm29_vm0 = vcmask 261120   ;;  %v241_v16 = vmov 0.0   ;;  %vm242_vm1 = vmmov 0   ;;  %vm83_vm2 = vcmask 257024   ;;  %s299_s0 = inlined_call_operand.vmem [shape: bf16[16,32], index: 0, kind: input, shape index: {}]   ;;  %s300_s3 = inlined_call_operand.vmem [shape: bf16[32,128], index: 3, kind: input, shape index: {}]   ;;  %s301_s1 = inlined_call_operand.vmem [shape: f32[1,32], index: 1, kind: input, shape index: {}]   ;;  %s302_s2 = inlined_call_operand.vmem [shape: f32[1,32], index: 2, kind: input, shape index: {}]   ;;  %s303_s4 = inlined_call_operand.vmem [shape: f32[1,128], index: 4, kind: input, shape index: {}]   ;;  %s304_s5 = inlined_call_operand.vmem [shape: bf16[16,128], index: 5, kind: output, shape index: {}]  }
   0x1   :  { %v209_v0 = vld [vmem:[%s299_s0] sm:$0xff]   ;;  %v230_v15 = vld [vmem:[%s300_s3 + $0x8] sm:$0xff]   ;;  %220 = vmatprep.subr.bf16.mxu0 %v241_v16  ;;  %224 = vmatprep.mubr.msk.bf16.mxu0 %vm242_vm1, %v241_v16 }
   0x2   :  { %v210_v1 = vunpack.c.l.bf16 %v209_v0  ;;  %v211_v2 = vunpack.c.h.bf16 %v209_v0  ;;  %221 = vmatpush3.bf16.msra.mxu0 %v230_v15  ;;  %v231_v17 = vld [vmem:[%s300_s3] sm:$0xff]  }
   0x3   :  { %222 = vmatprep.subr.bf16.mxu0 %v241_v16  ;;  %v193_v25 = vld [vmem:[%s301_s1] ss:$0 sm:$0xff] }
   0x4   :  { %v30_v3 = vsel %vm29_vm0, %v210_v1, 0.0  ;;  %v33_v4 = vsel %vm29_vm0, %v211_v2, 0.0  ;;  %v194_v27 = vld [vmem:[%s302_s2] ss:$0 sm:$0xff] }
   0x5   :  { %31 = vadd.xlane.f32.xlu0 %v30_v3  ;;  %v197_v37 = vld [vmem:[%s303_s4] ss:$0 sm:$0xff] }
   0x6   :  { %223 = vmatpush3.bf16.msra.mxu0 %v231_v17 }
   0x9   :  { %34 = vadd.xlane.f32.xlu0 %v33_v4 }
  0x8e   :  { %v32_v5 = vpop.xlane.xlu0 %31 }
  0x8f   :  { %v37_v6 = vmul.f32 0.03125, %v32_v5 }
  0x91   :  { %v39_v7 = vsub.f32 %v210_v1, %v37_v6 }
  0x92   :  { %v35_v8 = vpop.xlane.xlu0 %34 }
  0x93   :  { %v38_v9 = vmul.f32 0.03125, %v35_v8  ;;  %v41_v10 = vmul.f32 %v39_v7, %v39_v7 }
  0x95   :  { %v40_v11 = vsub.f32 %v211_v2, %v38_v9  ;;  %v43_v12 = vsel %vm29_vm0, %v41_v10, 0.0 }
  0x96   :  { %44 = vadd.xlane.f32.xlu1 %v43_v12 }
  0x97   :  { %v42_v13 = vmul.f32 %v40_v11, %v40_v11 }
  0x99   :  { %v46_v14 = vsel %vm29_vm0, %v42_v13, 0.0 }
  0x9a   :  { %47 = vadd.xlane.f32.xlu1 %v46_v14 }
 0x11f   :  { %v45_v18 = vpop.xlane.xlu1 %44 }
 0x120   :  { %v49_v19 = vmul.f32 0.03125, %v45_v18 }
 0x122   :  { %v51_v20 = vadd.f32 1e-05, %v49_v19 }
 0x123   :  { %v48_v21 = vpop.xlane.xlu1 %47 }
 0x124   :  { %233 = vrsqrt.f32 %v51_v20  ;;  %v50_v22 = vmul.f32 0.03125, %v48_v21 }
 0x126   :  { %v52_v23 = vadd.f32 1e-05, %v50_v22 }
 0x128   :  { %235 = vrsqrt.f32 %v52_v23 }
 0x131   :  { %v234_v24 = vpop.eup %233 }
 0x132   :  { %v55_v26 = vmul.f32 %v234_v24, %v39_v7 }
 0x134   :  { %v64_v28 = vmul.f32 %v193_v25, %v55_v26 }
 0x135   :  { %v236_v29 = vpop.eup %235 }
 0x136   :  { %v73_v30 = vadd.f32 %v194_v27, %v64_v28  ;;  %v56_v31 = vmul.f32 %v236_v29, %v40_v11 }
 0x138   :  { %v204_v32 = vpack.c.bf16 %v73_v30, %v73_v30  ;;  %v65_v33 = vmul.f32 %v193_v25, %v56_v31 }
 0x13a   :  { %84 = vst.msk [vmem:[#allocation2] sm:$0xf] %vm83_vm2, %v204_v32  ;;  %v74_v34 = vadd.f32 %v194_v27, %v65_v33 }
 0x13c   :  { %v205_v35 = vpack.c.bf16 %v74_v34, %v74_v34 }
 0x13e   :  { %85 = vst.msk [vmem:[#allocation2 + $0x4] sm:$0xf] %vm83_vm2, %v205_v35 }
 0x145   :  { %v232_v36 = vld [vmem:[#allocation2] sm:$0xff]  }
 0x146   :  { %225 = vmatmul.mubr.msk.bf16.vlgmr.msra.gmra.mxu0 %vm29_vm0, %v232_v36 }
 0x206   :  { %v154_v38 = vpop.f32.mrf.mxu0 }
 0x207   :  { %v155_v39 = vadd.f32 %v197_v37, %v154_v38 }
 0x208   :  { %v226_v40 = vpop.f32.mrf.mxu0 }
 0x209   :  { %v163_v41 = vmul.f32 0.044715, %v155_v39  ;;  %v161_v57 = vmul.f32 0.5, %v155_v39 }
 0x20a   :  { %v157_v42 = vpop.f32.mrf.mxu0 }
 0x20b   :  { %v165_v43 = vmul.f32 %v163_v41, %v155_v39  ;;  %v158_v44 = vadd.f32 %v197_v37, %v157_v42 }
 0x20c   :  { %v227_v45 = vpop.f32.mrf.mxu0 }
 0x20d   :  { %v167_v46 = vmul.f32 %v165_v43, %v155_v39  ;;  %v164_v47 = vmul.f32 0.044715, %v158_v44  ;;  %v162_v58 = vmul.f32 0.5, %v158_v44 }
 0x20f   :  { %v169_v48 = vadd.f32 %v167_v46, %v155_v39  ;;  %v166_v49 = vmul.f32 %v164_v47, %v158_v44 }
 0x211   :  { %v171_v50 = vmul.f32 0.7978846, %v169_v48  ;;  %v168_v51 = vmul.f32 %v166_v49, %v158_v44 }
 0x213   :  { %237 = vtanh.f32 %v171_v50  ;;  %v170_v52 = vadd.f32 %v168_v51, %v158_v44 }
 0x215   :  { %v172_v53 = vmul.f32 0.7978846, %v170_v52 }
 0x217   :  { %239 = vtanh.f32 %v172_v53 }
 0x220   :  { %v238_v54 = vpop.eup %237 }
 0x221   :  { %v175_v55 = vadd.f32 1.0, %v238_v54 }
 0x223   :  { %v177_v60 = vmul.f32 %v175_v55, %v161_v57 }
 0x224   :  { %v240_v56 = vpop.eup %239 }
 0x225   :  { %v176_v59 = vadd.f32 1.0, %v240_v56 }
 0x227   :  { %v178_v61 = vmul.f32 %v176_v59, %v162_v58 }
 0x229   :  { %v215_v62 = vpack.c.bf16 %v178_v61, %v177_v60 }
 0x22b   :  { %216 = vst [vmem:[%s304_s5] sm:$0xff] %v215_v62  }

// kernel: gpt2_forward.13
= control target key start
LH: loop header
LB: loop body
LE: loop exit
PB: predicated region body
PF: predicated region fallthrough
CT: control target
= control target key end

     0   :  { %v143_v0 = vmov 0.0   ;;  %vm144_vm0 = vmmov 0   ;;  %vm48_vm1 = vcmask 261120   ;;  %vm107_vm2 = vcmask 257024   ;;  %s191_s1 = inlined_call_operand.vmem [shape: bf16[32,32], index: 1, kind: input, shape index: {}]   ;;  %s192_s0 = inlined_call_operand.vmem [shape: bf16[16,32], index: 0, kind: input, shape index: {}]   ;;  %s193_s3 = inlined_call_operand.vmem [shape: bf16[16,32], index: 3, kind: input, shape index: {}]   ;;  %s194_s2 = inlined_call_operand.vmem [shape: f32[1,32], index: 2, kind: input, shape index: {}]   ;;  %s195_s4 = inlined_call_operand.vmem [shape: bf16[16,32], index: 4, kind: output, shape index: {}]  }
   0x1   :  { %130 = vmatprep.subr.bf16.mxu0 %v143_v0  ;;  %v140_v1 = vld [vmem:[%s191_s1 + $0x8] sm:$0xff]   ;;  %134 = vmatprep.mubr.msk.bf16.mxu0 %vm144_vm0, %v143_v0  ;;  %v141_v2 = vld [vmem:[%s191_s1] sm:$0xff]  }
   0x2   :  { %131 = vmatpush3.bf16.msra.mxu0 %v140_v1  ;;  %v142_v3 = vld [vmem:[%s192_s0] sm:$0xff]  }
   0x3   :  { %132 = vmatprep.subr.bf16.mxu0 %v143_v0  ;;  %v124_v4 = vld [vmem:[%s193_s3] sm:$0xff]  }
   0x4   :  { %v114_v5 = vld [vmem:[%s194_s2] ss:$0 sm:$0xff]  ;;  %v125_v6 = vunpack.c.l.bf16 %v124_v4  ;;  %v126_v11 = vunpack.c.h.bf16 %v124_v4 }
   0x6   :  { %133 = vmatpush3.bf16.msra.mxu0 %v141_v2 }
   0x9   :  { %135 = vmatmul.mubr.msk.bf16.vlgmr.msra.gmra.mxu0 %vm48_vm1, %v142_v3 }
  0xc9   :  { %v86_v7 = vpop.f32.mrf.mxu0 }
  0xca   :  { %v87_v8 = vadd.f32 %v114_v5, %v86_v7 }
  0xcb   :  { %v136_v9 = vpop.f32.mrf.mxu0 }
  0xcc   :  { %v97_v10 = vadd.f32 %v125_v6, %v87_v8 }
  0xcd   :  { %v89_v12 = vpop.f32.mrf.mxu0 }
  0xce   :  { %v121_v13 = vpack.c.bf16 %v97_v10, %v97_v10  ;;  %v90_v14 = vadd.f32 %v114_v5, %v89_v12 }
  0xcf   :  { %v137_v15 = vpop.f32.mrf.mxu0 }
  0xd0   :  { %108 = vst.msk [vmem:[%s195_s4] sm:$0xf] %vm107_vm2, %v121_v13  ;;  %v98_v16 = vadd.f32 %v126_v11, %v90_v14 }
  0xd2   :  { %v122_v17 = vpack.c.bf16 %v98_v16, %v98_v16 }
  0xd4   :  { %109 = vst.msk [vmem:[%s195_s4 + $0x4] sm:$0xf] %vm107_vm2, %v122_v17 }

// kernel: gpt2_forward.12
= control target key start
LH: loop header
LB: loop body
LE: loop exit
PB: predicated region body
PF: predicated region fallthrough
CT: control target
= control target key end

     0   :  { %s1147_s9 = smov 0   ;;  %s1149_s10 = smov 0   ;;  %s1352_s0 = inlined_call_operand.vmem [shape: bf16[16,96], index: 0, kind: input, shape index: {}, may-alias: {0,1}]   ;;  %s1353_s1 = inlined_call_operand.vmem [shape: bf16[16,96], index: 1, kind: input, shape index: {}, may-alias: {0,1}]   ;;  %s1354_s2 = inlined_call_operand.vmem [shape: bf16[16,32], index: 2, kind: output, shape index: {}]  }
   0x1   :  { %s1151_s11 = smov 0  }
   0x2 LB: > { %s31_s12 = sadd.s32 1, %s1105_s10  ;;  %p930_p0 = scmp.ge.s32.totalorder %s1109_s11, 1  ;;  %s1109_s11 = sphi %s1151_s11, %s12_s11   ;;  %s1105_s10 = sphi %s1149_s10, %s1356_s10   ;;  %s1101_s9 = sphi %s1147_s9, %s1355_s9  }
   0x3   : > { %p33_p1 = scmp.ge.s32.totalorder %s31_s12, 2  ;;  %p157_p2 = scmp.lt.s32.totalorder %s1109_s11, 3 }
   0x5   : > { %s1358_s12 = smov (%p33_p1, %s31_s12), 0  ;;  %p158_p3 = pnand %p930_p0, %p157_p2 }
   0x6   : > { %p187_p4 = scmp.lt.s32.totalorder (!%p158_p3), %s1101_s9, 1  ;;  %s1113_s17 = smov (!%p158_p3), 96  }
   0x7   : > { %161 = sbr.rel (%p158_p3) target bundleno = 1495 (0x5d7), region = 28  ;;  %s1116_s21 = smov (!%p158_p3), 64  }
   0x8   : > { %s1117_s22 = smov (!%p158_p3), 88   ;;  %s1118_s23 = smov (!%p158_p3), 120  }
   0x9   : > { %s1119_s24 = smov (!%p158_p3), 80   ;;  %s1120_s25 = smov (!%p158_p3), 112  }
   0xa   : > { %s1121_s26 = smov (!%p158_p3), 72   ;;  %s1122_s27 = smov (!%p158_p3), 104  }
   0xb   : > { %s1126_s28 = smov (!%p158_p3), 56   ;;  %s1127_s29 = smov (!%p158_p3), 48  }
   0xc   : > { %v1111_v0 = vmov 0.0   ;;  %vm1112_vm0 = vmmov 0   ;;  %s1360_s9 = smov (!%p187_p4, %s1101_s9), 1  ;;  %vm242_vm1 = vcmask 64512   ;;  %vm214_vm2 = vcmask 31744   ;;  %s1128_s30 = smov 40  }
   0xd   : > { %962 = vmatprep.subr.bf16.mxu0 %v1111_v0  ;;  %964 = vmatprep.mubr.msk.bf16.mxu0 %vm1112_vm0, %v1111_v0  ;;  %s1171_s13 = sshll.u32 %s1360_s9, 2  ;;  %v1114_v6 = vmov -inf   ;;  %216 = vst.msk [vmem:[#allocation4] sm:$0xff] %vm214_vm2, %v1111_v0  ;;  %v224_v7 = vlaneseq  ;;  %v1115_v16 = vmov 0   ;;  %vm312_vm4 = vcmask 7168   ;;  %s1129_s3 = smov 8  }
   0xe   : > { %968 = vmatprep.subr.bf16.mxu1 %v1111_v0  ;;  %970 = vmatprep.mubr.msk.bf16.mxu1 %vm1112_vm0, %v1111_v0  ;;  %s198_s16 = scalar_lea.vmem %s1353_s1, %s1171_s13  ;;  %s190_s20 = scalar_lea.vmem %s1352_s0, %s1171_s13  ;;  %215 = vst.msk [vmem:[#allocation3] sm:$0xff] %vm214_vm2, %v1114_v6  ;;  %vm327_vm5 = vcmask 1043456   ;;  %v1123_v54 = vmov 1   ;;  %v1124_v61 = vmov 2   ;;  %vm450_vm6 = vcmask 15368  }
   0xf   : > { %v1177_v1 = vld [vmem:[%s198_s16] ss:$0 sps:$4 sm:$0xff]   ;;  %v1190_v8 = vshrl.u32 %v224_v7, 7  ;;  %v1192_v9 = vand.u32 127, %v224_v7  ;;  %1055 = vset.pattern.permute.xlu1 %v1115_v16  ;;  %1056 = vset.pattern.permute.xlu0 %v1123_v54  ;;  %vm589_vm7 = vcmask 23568   ;;  %vm728_vm8 = vcmask 31768   ;;  %s206_s8 = scalar_lea.vmem %s1354_s2, %s1171_s13 }
  0x10   : > { %240 = vrot.lane.b32.xlu0 %v1177_v1, %s1113_s17  ;;  %v234_v4 = vld [vmem:[%s190_s20] sm:$0xf]  ;;  %vm217_vm9 = vcmask 261120   ;;  %s1130_s4 = smov 16   ;;  %s1131_s5 = smov 24   ;;  %vm513_vm10 = vcmask 130112  }
  0x11   : > { %v236_v5 = vmul.bf16 1052065461, %v234_v4  ;;  %vm233_vm3 = vcmp.le.s32.totalorder %v1192_v9, %v1190_v8  ;;  %v1125_v4 = vmov 3   ;;  %218 = vst.msk [vmem:[#allocation2] sm:$0xff] %vm217_vm9, %v1111_v0  ;;  %vm652_vm11 = vcmask 195712  }
  0x12   : > { %vm791_vm12 = vcmask 261312   ;;  %vm844_vm13 = vcmask 257024  }
  0x13   : > { %v937_v21 = vcombine.low %v236_v5, %v236_v5 }
  0x15   : > { %v1201_v17 = vld [vmem:[#allocation3] sm:$0xff] }
  0x82   : > { %v241_v2 = vpop.permute.xlu0 %240 }
  0x83   : > { %v247_v3 = vsel %vm242_vm1, %v241_v2, 0 }
  0x84   : > { %963 = vmatpush3.bf16.xpose.msra.mxu0 %v247_v3 }
  0x85   : > { %980 = vmatprep.subr.bf16.mxu0 %v1111_v0 }
  0x8b   : > { %965 = vmatmul.mubr.msk.bf16.vlgmr.msra.gmra.mxu0 %vm242_vm1, %v236_v5 }
  0x8c   : > { %982 = vmatprep.mubr.msk.bf16.mxu0 %vm1112_vm0, %v1111_v0 }
 0x14b   : > { %v283_v10 = vpop.f32.mrf.mxu0 }
 0x14c   : > { %v289_v11 = vsel %vm233_vm3, %v283_v10, -1e+30 }
 0x14d   : > { %v966_v12 = vpop.f32.mrf.mxu0  ;;  %v291_v13 = vsel %vm242_vm1, %v289_v11, -inf }
 0x14e   : > { %292 = vmax.xlane.f32.xlu0 %v291_v13 }
 0x14f   : > { %v286_v14 = vpop.f32.mrf.mxu0 }
 0x151   : > { %v967_v15 = vpop.f32.mrf.mxu0 }
 0x1d7   : > { %v293_v18 = vpop.xlane.xlu0 %292 }
 0x1d8   : > { %v1204_v19 = vmax.f32 %v1201_v17, %v293_v18 }
 0x1da   : > { %v295_v20 = vsub.f32 %v1201_v17, %v1204_v19  ;;  %373 = vst.msk [vmem:[#allocation3] sm:$0xff] %vm312_vm4, %v1204_v19  ;;  %300 = vperm.xlu1 %1055, %v1204_v19  }
 0x1dc   : > { %v296_v13 = vmul.f32 1.442695, %v295_v20 }
 0x1de   : > { %322 = vrot.lane.b32.xlu1 %v1177_v1, %s1116_s21 }
 0x1df   : > { %1057 = vset.pattern.permute.xlu1 %v1124_v61 }
 0x1e1   : > { %v1260_v63 = vld [vmem:[#allocation3] sm:$0xff] }
 0x1e2   : > { %379 = vrot.lane.b32.xlu1 %v1177_v1, %s1117_s22 }
 0x1e6   : > { %377 = vrot.lane.b32.xlu1 %v937_v21, %s1118_s23 }
 0x1ea   : > { %518 = vrot.lane.b32.xlu1 %v1177_v1, %s1119_s24 }
 0x1ee   : > { %516 = vrot.lane.b32.xlu1 %v937_v21, %s1120_s25 }
 0x1f2   : > { %657 = vrot.lane.b32.xlu1 %v1177_v1, %s1121_s26 }
 0x1f6   : > { %655 = vrot.lane.b32.xlu1 %v937_v21, %s1122_s27 }
 0x255   : > { %v301_v22 = vpop.permute.xlu1 %300 }
 0x256   : > { %v303_v23 = vsub.f32 %v289_v11, %v301_v22 }
 0x258   : > { %v304_v24 = vmul.f32 1.442695, %v303_v23 }
 0x259   : > { %v323_v25 = vpop.permute.xlu1 %322 }
 0x25a   : > { %1069 = vpow2.f32 %v304_v24  ;;  %v329_v26 = vsel %vm327_vm5, %v323_v25, 0 }
 0x25b   : > { %969 = vmatpush3.bf16.msra.mxu1 %v329_v26  ;;  %1071 = vpow2.f32 %v296_v13 }
 0x25c   : > { %974 = vmatprep.subr.bf16.mxu1 %v1111_v0 }
 0x25d   : > { %v380_v27 = vpop.permute.xlu1 %379 }
 0x25e   : > { %v385_v30 = vsel %vm242_vm1, %v380_v27, 0 }
 0x261   : > { %v378_v28 = vpop.permute.xlu1 %377 }
 0x265   : > { %v519_v32 = vpop.permute.xlu1 %518 }
 0x266   : > { %v524_v34 = vsel %vm242_vm1, %v519_v32, 0 }
 0x267   : > { %v1217_v29 = vpop.eup %1069 }
 0x268   : > { %v321_v31 = vpack.c.bf16 %v1217_v29, %v1217_v29  ;;  %v308_v12 = vsel %vm242_vm1, %v1217_v29, 0.0  ;;  %v1072_v18 = vpop.eup %1071 }
 0x269   : > { %v517_v33 = vpop.permute.xlu1 %516 }
 0x26a   : > { %971 = vmatmul.mubr.msk.bf16.vlgmr.msra.gmra.mxu1 %vm242_vm1, %v321_v31 }
 0x26b   : > { %975 = vmatpush3.bf16.xpose.msra.mxu1 %v385_v30  ;;  %976 = vmatprep.mubr.msk.bf16.mxu1 %vm1112_vm0, %v1111_v0 }
 0x26c   : > { %986 = vmatprep.subr.bf16.mxu1 %v1111_v0 }
 0x26d   : > { %v658_v35 = vpop.permute.xlu1 %657 }
 0x26e   : > { %v663_v36 = vsel %vm242_vm1, %v658_v35, 0 }
 0x271   : > { %v656_v37 = vpop.permute.xlu1 %655 }
 0x272   : > { %977 = vmatmul.mubr.msk.bf16.vlgmr.msra.gmra.mxu1 %vm242_vm1, %v378_v28 }
 0x273   : > { %987 = vmatpush3.bf16.xpose.msra.mxu1 %v524_v34  ;;  %988 = vmatprep.mubr.msk.bf16.mxu1 %vm1112_vm0, %v1111_v0 }
 0x274   : > { %998 = vmatprep.subr.bf16.mxu1 %v1111_v0 }
 0x27a   : > { %989 = vmatmul.mubr.msk.bf16.vlgmr.msra.gmra.mxu1 %vm242_vm1, %v517_v33 }
 0x27b   : > { %999 = vmatpush3.bf16.xpose.msra.mxu1 %v663_v36  ;;  %1000 = vmatprep.mubr.msk.bf16.mxu1 %vm1112_vm0, %v1111_v0 }
 0x282   : > { %1001 = vmatmul.mubr.msk.bf16.vlgmr.msra.gmra.mxu1 %vm242_vm1, %v656_v37 }
 0x32a   : > { %v1236_v38 = vpop.f32.mrf.mxu1 }
 0x32c   : > { %v972_v39 = vpop.f32.mrf.mxu1 }
 0x32e   : > { %v368_v40 = vpop.f32.mrf.mxu1 }
 0x330   : > { %v973_v41 = vpop.f32.mrf.mxu1 }
 0x332   : > { %v421_v42 = vpop.f32.mrf.mxu1 }
 0x333   : > { %v1241_v43 = vsel %vm233_vm3, %v421_v42, -1e+30 }
 0x334   : > { %v978_v44 = vpop.f32.mrf.mxu1  ;;  %v429_v45 = vsel %vm242_vm1, %v1241_v43, -inf }
 0x335   : > { %430 = vmax.xlane.f32.xlu1 %v429_v45  ;;  %v306_v45 = vld [vmem:[#allocation4] sm:$0xff] }
 0x336   : > { %v424_v46 = vpop.f32.mrf.mxu1 }
 0x337   : > { %v307_v46 = vmul.f32 %v1072_v18, %v306_v45 }
 0x338   : > { %v979_v47 = vpop.f32.mrf.mxu1 }
 0x33a   : > { %v560_v48 = vpop.f32.mrf.mxu1 }
 0x33b   : > { %v1248_v49 = vsel %vm233_vm3, %v560_v48, -1e+30  ;;  %v314_v48 = vld [vmem:[#allocation2] sm:$0xff] }
 0x33c   : > { %v990_v50 = vpop.f32.mrf.mxu1  ;;  %v568_v51 = vsel %vm242_vm1, %v1248_v49, -inf }
 0x33d   : > { %569 = vmax.xlane.f32.xlu0 %v568_v51 }
 0x33e   : > { %v563_v52 = vpop.f32.mrf.mxu1 }
 0x340   : > { %v991_v53 = vpop.f32.mrf.mxu1 }
 0x342   : > { %v699_v55 = vpop.f32.mrf.mxu1 }
 0x343   : > { %v1255_v56 = vsel %vm233_vm3, %v699_v55, -1e+30 }
 0x344   : > { %v707_v57 = vsel %vm242_vm1, %v1255_v56, -inf  ;;  %v1002_v58 = vpop.f32.mrf.mxu1 }
 0x345   : > { %708 = vmax.xlane.f32.xlu0 %v707_v57 }
 0x346   : > { %v702_v59 = vpop.f32.mrf.mxu1 }
 0x348   : > { %v1003_v60 = vpop.f32.mrf.mxu1 }
 0x3be   : > { %v431_v62 = vpop.xlane.xlu1 %430 }
 0x3bf   : > { %v1263_v2 = vmax.f32 %v1260_v63, %v431_v62 }
 0x3c1   : > { %v433_v3 = vsub.f32 %v1260_v63, %v1263_v2  ;;  %515 = vst.msk [vmem:[#allocation3] sm:$0xff] %vm450_vm6, %v1263_v2  ;;  %438 = vperm.xlu0 %1056, %v1263_v2  }
 0x3c3   : > { %v434_v41 = vmul.f32 1.442695, %v433_v3 }
 0x3c5   : > { %1058 = vset.pattern.permute.xlu0 %v1125_v4 }
 0x3c6   : > { %v570_v5 = vpop.xlane.xlu0 %569 }
 0x3c8   : > { %v1271_v6 = vld [vmem:[#allocation3] sm:$0xff] }
 0x3c9   : > { %v1274_v7 = vmax.f32 %v1271_v6, %v570_v5 }
 0x3cb   : > { %v572_v8 = vsub.f32 %v1271_v6, %v1274_v7  ;;  %654 = vst.msk [vmem:[#allocation3] sm:$0xff] %vm589_vm7, %v1274_v7  ;;  %577 = vperm.xlu1 %1057, %v1274_v7  }
 0x3cd   : > { %v573_v52 = vmul.f32 1.442695, %v572_v8 }
 0x3ce   : > { %v709_v9 = vpop.xlane.xlu0 %708 }
 0x3cf   : > { %460 = vrot.lane.b32.xlu1 %v1177_v1, %s1126_s28 }
 0x3d0   : > { %1060 = vset.pattern.permute.xlu1 %v1123_v54 }
 0x3d2   : > { %v706_v10 = vld [vmem:[#allocation3] sm:$0xff] }
 0x3d3   : > { %v710_v11 = vmax.f32 %v706_v10, %v709_v9  ;;  %599 = vrot.lane.b32.xlu1 %v1177_v1, %s1127_s29 }
 0x3d5   : > { %793 = vst.msk [vmem:[#allocation3] sm:$0xff] %vm728_vm8, %v710_v11  ;;  %716 = vperm.xlu0 %1058, %v710_v11   ;;  %v711_v14 = vsub.f32 %v706_v10, %v710_v11 }
 0x3d7   : > { %738 = vrot.lane.b32.xlu1 %v1177_v1, %s1128_s30  ;;  %v712_v15 = vmul.f32 1.442695, %v711_v14 }
 0x3d9   : > { %1059 = vset.pattern.permute.xlu0 %v1115_v16  ;;  %1073 = vpow2.f32 %v712_v15 }
 0x3e6   : > { %v1292_v1 = vpop.eup %1073 }
 0x3f4   : > { %309 = vadd.xlane.f32.xlu0 %v308_v12 }
 0x40a   : > { %317 = vperm.xlu0 %1059, %v1072_v18  }
 0x40e   : > { %1062 = vset.pattern.permute.xlu0 %v1125_v4 }
 0x40f   : > { %733 = vperm.xlu0 %1062, %v1292_v1  }
 0x413   : > { %1064 = vset.pattern.permute.xlu0 %v1123_v54 }
 0x43c   : > { %v439_v21 = vpop.permute.xlu0 %438 }
 0x43d   : > { %v441_v17 = vsub.f32 %v1241_v43, %v439_v21 }
 0x43f   : > { %v442_v19 = vmul.f32 1.442695, %v441_v17 }
 0x441   : > { %1075 = vpow2.f32 %v442_v19 }
 0x446   : > { %v578_v20 = vpop.permute.xlu1 %577 }
 0x447   : > { %v580_v22 = vsub.f32 %v1248_v49, %v578_v20 }
 0x449   : > { %v581_v23 = vmul.f32 1.442695, %v580_v22 }
 0x44a   : > { %v461_v24 = vpop.permute.xlu1 %460 }
 0x44b   : > { %1077 = vpow2.f32 %v581_v23  ;;  %v466_v25 = vsel %vm327_vm5, %v461_v24, 0 }
 0x44c   : > { %981 = vmatpush3.bf16.msra.mxu0 %v466_v25 }
 0x44d   : > { %992 = vmatprep.subr.bf16.mxu0 %v1111_v0 }
 0x44e   : > { %v1076_v26 = vpop.eup %1075  ;;  %v600_v27 = vpop.permute.xlu1 %599 }
 0x44f   : > { %v446_v28 = vsel %vm242_vm1, %v1076_v26, 0.0  ;;  %v459_v29 = vpack.c.bf16 %v1076_v26, %v1076_v26  ;;  %v605_v30 = vsel %vm327_vm5, %v600_v27, 0 }
 0x450   : > { %447 = vadd.xlane.f32.xlu1 %v446_v28  ;;  %v717_v31 = vpop.permute.xlu0 %716 }
 0x451   : > { %v719_v32 = vsub.f32 %v1255_v56, %v717_v31  ;;  %983 = vmatmul.mubr.msk.bf16.vlgmr.msra.gmra.mxu0 %vm242_vm1, %v459_v29 }
 0x452   : > { %993 = vmatpush3.bf16.msra.mxu0 %v605_v30  ;;  %994 = vmatprep.mubr.msk.bf16.mxu0 %vm1112_vm0, %v1111_v0  ;;  %v739_v34 = vpop.permute.xlu1 %738 }
 0x453   : > { %v720_v33 = vmul.f32 1.442695, %v719_v32  ;;  %1004 = vmatprep.subr.bf16.mxu0 %v1111_v0  ;;  %v744_v39 = vsel %vm327_vm5, %v739_v34, 0 }
 0x455   : > { %1079 = vpow2.f32 %v720_v33 }
 0x456   : > { %1081 = vpow2.f32 %v434_v41 }
 0x457   : > { %1083 = vpow2.f32 %v573_v52 }
 0x458   : > { %v1078_v35 = vpop.eup %1077 }
 0x459   : > { %v585_v36 = vsel %vm242_vm1, %v1078_v35, 0.0  ;;  %v598_v37 = vpack.c.bf16 %v1078_v35, %v1078_v35 }
 0x45a   : > { %586 = vadd.xlane.f32.xlu1 %v585_v36 }
 0x45b   : > { %995 = vmatmul.mubr.msk.bf16.vlgmr.msra.gmra.mxu0 %vm242_vm1, %v598_v37 }
 0x45c   : > { %1005 = vmatpush3.bf16.msra.mxu0 %v744_v39  ;;  %1006 = vmatprep.mubr.msk.bf16.mxu0 %vm1112_vm0, %v1111_v0 }
 0x462   : > { %v1080_v40 = vpop.eup %1079 }
 0x463   : > { %v724_v42 = vsel %vm242_vm1, %v1080_v40, 0.0  ;;  %v737_v43 = vpack.c.bf16 %v1080_v40, %v1080_v40  ;;  %v1082_v44 = vpop.eup %1081 }
 0x464   : > { %725 = vadd.xlane.f32.xlu1 %v724_v42  ;;  %v1084_v57 = vpop.eup %1083 }
 0x465   : > { %1007 = vmatmul.mubr.msk.bf16.vlgmr.msra.gmra.mxu0 %vm242_vm1, %v737_v43 }
 0x475   : > { %455 = vperm.xlu1 %1060, %v1082_v44  }
 0x479   : > { %1061 = vset.pattern.permute.xlu1 %v1124_v61 }
 0x47d   : > { %v310_v47 = vpop.xlane.xlu0 %309 }
 0x47e   : > { %v311_v0 = vadd.f32 %v310_v47, %v307_v46 }
 0x480   : > { %313 = vst.msk [vmem:[#allocation4] sm:$0xff] %vm312_vm4, %v311_v0 }
 0x485   : > { %v318_v49 = vpop.permute.xlu0 %317 }
 0x486   : > { %v320_v50 = vmul.f32 %v318_v49, %v314_v48 }
 0x487   : > { %v444_v53 = vld [vmem:[#allocation4] sm:$0xff] }
 0x488   : > { %v371_v51 = vadd.f32 %v1236_v38, %v320_v50  ;;  %v445_v54 = vmul.f32 %v1082_v44, %v444_v53 }
 0x48a   : > { %372 = vst.msk [vmem:[#allocation2] sm:$0xff] %vm242_vm1, %v371_v51 }
 0x491   : > { %v452_v17 = vld [vmem:[#allocation2] sm:$0xff] }
 0x4d9   : > { %v448_v55 = vpop.xlane.xlu1 %447 }
 0x4da   : > { %v449_v56 = vadd.f32 %v448_v55, %v445_v54 }
 0x4dc   : > { %451 = vst.msk [vmem:[#allocation4] sm:$0xff] %vm450_vm6, %v449_v56 }
 0x4e3   : > { %v583_v58 = vld [vmem:[#allocation4] sm:$0xff]  ;;  %v587_v60 = vpop.xlane.xlu1 %586 }
 0x4e4   : > { %v584_v59 = vmul.f32 %v1084_v57, %v583_v58 }
 0x4e6   : > { %v588_v62 = vadd.f32 %v587_v60, %v584_v59 }
 0x4e8   : > { %590 = vst.msk [vmem:[#allocation4] sm:$0xff] %vm589_vm7, %v588_v62 }
 0x4ed   : > { %v726_v2 = vpop.xlane.xlu1 %725 }
 0x4ef   : > { %v722_v38 = vld [vmem:[#allocation4] sm:$0xff] }
 0x4f0   : > { %v723_v63 = vmul.f32 %v1292_v1, %v722_v38 }
 0x4f2   : > { %v727_v3 = vadd.f32 %v726_v2, %v723_v63 }
 0x4f4   : > { %729 = vst.msk [vmem:[#allocation4] sm:$0xff] %vm728_vm8, %v727_v3 }
 0x4fb   : > { %v809_v5 = vld [vmem:[#allocation4] sm:$0xff] }
 0x4fc   : > { %1085 = vrcp.f32 %v809_v5 }
 0x509   : > { %v1086_v6 = vpop.eup %1085 }
 0x50a   : > { %814 = vperm.xlu0 %1064, %v1086_v6  }
 0x50e   : > { %1067 = vset.pattern.permute.xlu0 %v1125_v4 }
 0x511   : > { %v502_v7 = vpop.f32.mrf.mxu0 }
 0x512   : > { %509 = vrot.lane.b32.xlu1 %v502_v7, %s1129_s3 }
 0x513   : > { %v984_v8 = vpop.f32.mrf.mxu0 }
 0x515   : > { %v505_v9 = vpop.f32.mrf.mxu0 }
 0x516   : > { %594 = vperm.xlu1 %1061, %v1084_v57  }
 0x517   : > { %v985_v10 = vpop.f32.mrf.mxu0 }
 0x51a   : > { %1063 = vset.pattern.permute.xlu1 %v1115_v16  ;;  %v456_v16 = vpop.permute.xlu1 %455 }
 0x51b   : > { %v641_v11 = vpop.f32.mrf.mxu0  ;;  %v458_v19 = vmul.f32 %v456_v16, %v452_v17 }
 0x51c   : > { %648 = vrot.lane.b32.xlu1 %v641_v11, %s1130_s4 }
 0x51d   : > { %v996_v12 = vpop.f32.mrf.mxu0 }
 0x51f   : > { %v644_v13 = vpop.f32.mrf.mxu0 }
 0x521   : > { %v997_v14 = vpop.f32.mrf.mxu0 }
 0x525   : > { %v780_v15 = vpop.f32.mrf.mxu0 }
 0x526   : > { %787 = vrot.lane.b32.xlu1 %v780_v15, %s1131_s5 }
 0x527   : > { %v1008_v18 = vpop.f32.mrf.mxu0 }
 0x529   : > { %v783_v1 = vpop.f32.mrf.mxu0 }
 0x52a   : > { %803 = vperm.xlu1 %1063, %v1086_v6  }
 0x52b   : > { %v1009_v21 = vpop.f32.mrf.mxu0 }
 0x52e   : > { %1065 = vset.pattern.permute.xlu1 %v1124_v61  ;;  %v734_v61 = vpop.permute.xlu0 %733 }
 0x52f   : > { %825 = vperm.xlu1 %1065, %v1086_v6  }
 0x533   : > { %1066 = vset.pattern.permute.xlu1 %v1125_v4 }
 0x534   : > { %836 = vperm.xlu1 %1066, %v1086_v6  }
 0x584   : > { %v510_v20 = vpop.permute.xlu1 %509 }
 0x585   : > { %v512_v22 = vadd.f32 %v510_v20, %v458_v19  ;;  %v815_v34 = vpop.permute.xlu0 %814 }
 0x587   : > { %514 = vst.msk [vmem:[#allocation2] sm:$0xff] %vm513_vm10, %v512_v22 }
 0x58e   : > { %v591_v24 = vld [vmem:[#allocation2] sm:$0xff] }
 0x591   : > { %v595_v23 = vpop.permute.xlu1 %594 }
 0x592   : > { %v597_v25 = vmul.f32 %v595_v23, %v591_v24 }
 0x595   : > { %v649_v26 = vpop.permute.xlu1 %648 }
 0x596   : > { %v651_v27 = vadd.f32 %v649_v26, %v597_v25 }
 0x598   : > { %653 = vst.msk [vmem:[#allocation2] sm:$0xff] %vm652_vm11, %v651_v27 }
 0x599   : > { %v788_v29 = vpop.permute.xlu1 %787 }
 0x59f   : > { %v730_v28 = vld [vmem:[#allocation2] sm:$0xff] }
 0x5a0   : > { %v736_v4 = vmul.f32 %v734_v61, %v730_v28 }
 0x5a2   : > { %v790_v30 = vadd.f32 %v788_v29, %v736_v4 }
 0x5a4   : > { %792 = vst.msk [vmem:[#allocation2] sm:$0xff] %vm791_vm12, %v790_v30 }
 0x5a5   : > { %v804_v32 = vpop.permute.xlu1 %803 }
 0x5aa   : > { %v826_v39 = vpop.permute.xlu1 %825 }
 0x5ab   : > { %v800_v31 = vld [vmem:[#allocation2] sm:$0xff] }
 0x5ac   : > { %v806_v33 = vmul.f32 %v804_v32, %v800_v31 }
 0x5ae   : > { %808 = vst.msk [vmem:[#allocation2] sm:$0xff] %vm242_vm1, %v806_v33 }
 0x5af   : > { %v837_v42 = vpop.permute.xlu1 %836 }
 0x5b5   : > { %v811_v35 = vld [vmem:[#allocation2] sm:$0xff] }
 0x5b6   : > { %v817_v36 = vmul.f32 %v815_v34, %v811_v35 }
 0x5b8   : > { %819 = vst.msk [vmem:[#allocation2] sm:$0xff] %vm513_vm10, %v817_v36 }
 0x5bf   : > { %v822_v37 = vld [vmem:[#allocation2] sm:$0xff] }
 0x5c0   : > { %v828_v40 = vmul.f32 %v826_v39, %v822_v37 }
 0x5c2   : > { %830 = vst.msk [vmem:[#allocation2] sm:$0xff] %vm652_vm11, %v828_v40 }
 0x5c9   : > { %v833_v41 = vld [vmem:[#allocation2] sm:$0xff] }
 0x5ca   : > { %v839_v43 = vmul.f32 %v837_v42, %v833_v41 }
 0x5cc   : > { %841 = vst.msk [vmem:[#allocation2] sm:$0xff] %vm791_vm12, %v839_v43 }
 0x5d3   : > { %v842_v44 = vld [vmem:[#allocation2] sm:$0xff] }
 0x5d4   : > { %v843_v45 = vpack.c.bf16 %v842_v44, %v842_v44 }
 0x5d6   : > { %845 = vst.msk [vmem:[%s206_s8] sm:$0xf] %vm844_vm13, %v843_v45 }
 0x5d7 PF: > { %s12_s11 = sadd.s32 1, %s1109_s11   ;;  %s1355_s9 = smov %s1105_s10 }
 0x5d8   : > { %p9_p5 = scmp.ge.s32.totalorder %s12_s11, 4   ;;  %s1356_s10 = smov %s1358_s12 }
 0x5da   :  { %11 = sbr.rel (!%p9_p5) target bundleno = 2 (0x2), region = 73 }

// kernel: gpt2_forward.15
= control target key start
LH: loop header
LB: loop body
LE: loop exit
PB: predicated region body
PF: predicated region fallthrough
CT: control target
= control target key end

     0   :  { %v217_v0 = vmov 0.0   ;;  %vm218_vm0 = vmmov 0   ;;  %vm152_vm1 = vcmask 257024   ;;  %s283_s1 = inlined_call_operand.vmem [shape: bf16[128,32], index: 1, kind: input, shape index: {}]   ;;  %s284_s0 = inlined_call_operand.vmem [shape: bf16[16,128], index: 0, kind: input, shape index: {}]   ;;  %s285_s3 = inlined_call_operand.vmem [shape: bf16[16,32], index: 3, kind: input, shape index: {}]   ;;  %s286_s2 = inlined_call_operand.vmem [shape: f32[1,32], index: 2, kind: input, shape index: {}]   ;;  %s287_s4 = inlined_call_operand.vmem [shape: bf16[16,32], index: 4, kind: output, shape index: {}]  }
   0x1   :  { %186 = vmatprep.subr.bf16.mxu0 %v217_v0  ;;  %v208_v1 = vld [vmem:[%s283_s1 + $0x38] sm:$0xff]   ;;  %202 = vmatprep.mubr.msk.bf16.mxu0 %vm218_vm0, %v217_v0  ;;  %v209_v2 = vld [vmem:[%s283_s1 + $0x30] sm:$0xff]   ;;  %v210_v3 = vld [vmem:[%s283_s1 + $0x28] sm:$0xff]  }
   0x2   :  { %187 = vmatpush3.bf16.msra.mxu0 %v208_v1  ;;  %v211_v4 = vld [vmem:[%s283_s1 + $0x20] sm:$0xff]   ;;  %v212_v5 = vld [vmem:[%s283_s1 + $0x18] sm:$0xff]   ;;  %v213_v6 = vld [vmem:[%s283_s1 + $0x10] sm:$0xff]  }
   0x3   :  { %188 = vmatprep.subr.bf16.mxu0 %v217_v0  ;;  %v214_v7 = vld [vmem:[%s283_s1 + $0x8] sm:$0xff]   ;;  %v215_v8 = vld [vmem:[%s283_s1] sm:$0xff]  }
   0x4   :  { %v216_v9 = vld [vmem:[%s284_s0] sm:$0xff]  }
   0x5   :  { %v174_v10 = vld [vmem:[%s285_s3] sm:$0xff]  }
   0x6   :  { %189 = vmatpush3.bf16.msra.mxu0 %v209_v2  ;;  %v159_v11 = vld [vmem:[%s286_s2] ss:$0 sm:$0xff]  ;;  %v175_v12 = vunpack.c.l.bf16 %v174_v10  ;;  %v176_v17 = vunpack.c.h.bf16 %v174_v10 }
   0x7   :  { %190 = vmatprep.subr.bf16.mxu0 %v217_v0 }
   0xa   :  { %191 = vmatpush3.bf16.msra.mxu0 %v210_v3 }
   0xb   :  { %192 = vmatprep.subr.bf16.mxu0 %v217_v0 }
   0xe   :  { %193 = vmatpush3.bf16.msra.mxu0 %v211_v4 }
   0xf   :  { %194 = vmatprep.subr.bf16.mxu0 %v217_v0 }
  0x12   :  { %195 = vmatpush3.bf16.msra.mxu0 %v212_v5 }
  0x13   :  { %196 = vmatprep.subr.bf16.mxu0 %v217_v0 }
  0x16   :  { %197 = vmatpush3.bf16.msra.mxu0 %v213_v6 }
  0x17   :  { %198 = vmatprep.subr.bf16.mxu0 %v217_v0 }
  0x1a   :  { %199 = vmatpush3.bf16.msra.mxu0 %v214_v7 }
  0x1b   :  { %200 = vmatprep.subr.bf16.mxu0 %v217_v0 }
  0x1e   :  { %201 = vmatpush3.bf16.msra.mxu0 %v215_v8 }
  0x21   :  { %203 = vmatmul.mubr.bf16.vlgmr.msra.gmra.mxu0 %v216_v9 }
  0xe1   :  { %v131_v13 = vpop.f32.mrf.mxu0 }
  0xe2   :  { %v132_v14 = vadd.f32 %v159_v11, %v131_v13 }
  0xe3   :  { %v204_v15 = vpop.f32.mrf.mxu0 }
  0xe4   :  { %v142_v16 = vadd.f32 %v175_v12, %v132_v14 }
  0xe5   :  { %v134_v18 = vpop.f32.mrf.mxu0 }
  0xe6   :  { %v171_v19 = vpack.c.bf16 %v142_v16, %v142_v16  ;;  %v135_v20 = vadd.f32 %v159_v11, %v134_v18 }
  0xe7   :  { %v205_v21 = vpop.f32.mrf.mxu0 }
  0xe8   :  { %153 = vst.msk [vmem:[%s287_s4] sm:$0xf] %vm152_vm1, %v171_v19  ;;  %v143_v22 = vadd.f32 %v176_v17, %v135_v20 }
  0xea   :  { %v172_v23 = vpack.c.bf16 %v143_v22, %v143_v22 }
  0xec   :  { %154 = vst.msk [vmem:[%s287_s4 + $0x4] sm:$0xf] %vm152_vm1, %v172_v23 }

// kernel: gpt2_forward.21
= control target key start
LH: loop header
LB: loop body
LE: loop exit
PB: predicated region body
PF: predicated region fallthrough
CT: control target
= control target key end

     0   :  { %vm26_vm0 = vcmask 261120   ;;  %v208_v16 = vmov 0.0   ;;  %vm209_vm1 = vmmov 0   ;;  %vm80_vm2 = vcmask 257024   ;;  %s258_s0 = inlined_call_operand.vmem [shape: bf16[16,32], index: 0, kind: input, shape index: {}]   ;;  %s259_s3 = inlined_call_operand.vmem [shape: bf16[32,128], index: 3, kind: input, shape index: {}]   ;;  %s260_s1 = inlined_call_operand.vmem [shape: f32[1,32], index: 1, kind: input, shape index: {}]   ;;  %s261_s2 = inlined_call_operand.vmem [shape: f32[1,32], index: 2, kind: input, shape index: {}]   ;;  %s262_s4 = inlined_call_operand.vmem [shape: bf16[16,128], index: 4, kind: output, shape index: {}]  }
   0x1   :  { %v180_v0 = vld [vmem:[%s258_s0] sm:$0xff]   ;;  %v201_v15 = vld [vmem:[%s259_s3 + $0x8] sm:$0xff]   ;;  %191 = vmatprep.subr.bf16.mxu0 %v208_v16  ;;  %195 = vmatprep.mubr.msk.bf16.mxu0 %vm209_vm1, %v208_v16 }
   0x2   :  { %v181_v1 = vunpack.c.l.bf16 %v180_v0  ;;  %v182_v2 = vunpack.c.h.bf16 %v180_v0  ;;  %192 = vmatpush3.bf16.msra.mxu0 %v201_v15  ;;  %v202_v17 = vld [vmem:[%s259_s3] sm:$0xff]  }
   0x3   :  { %193 = vmatprep.subr.bf16.mxu0 %v208_v16  ;;  %v165_v25 = vld [vmem:[%s260_s1] ss:$0 sm:$0xff] }
   0x4   :  { %v27_v3 = vsel %vm26_vm0, %v181_v1, 0.0  ;;  %v30_v4 = vsel %vm26_vm0, %v182_v2, 0.0  ;;  %v166_v27 = vld [vmem:[%s261_s2] ss:$0 sm:$0xff] }
   0x5   :  { %28 = vadd.xlane.f32.xlu0 %v27_v3 }
   0x6   :  { %194 = vmatpush3.bf16.msra.mxu0 %v202_v17 }
   0x9   :  { %31 = vadd.xlane.f32.xlu0 %v30_v4 }
  0x8e   :  { %v29_v5 = vpop.xlane.xlu0 %28 }
  0x8f   :  { %v34_v6 = vmul.f32 0.03125, %v29_v5 }
  0x91   :  { %v36_v7 = vsub.f32 %v181_v1, %v34_v6 }
  0x92   :  { %v32_v8 = vpop.xlane.xlu0 %31 }
  0x93   :  { %v35_v9 = vmul.f32 0.03125, %v32_v8  ;;  %v38_v10 = vmul.f32 %v36_v7, %v36_v7 }
  0x95   :  { %v37_v11 = vsub.f32 %v182_v2, %v35_v9  ;;  %v40_v12 = vsel %vm26_vm0, %v38_v10, 0.0 }
  0x96   :  { %41 = vadd.xlane.f32.xlu1 %v40_v12 }
  0x97   :  { %v39_v13 = vmul.f32 %v37_v11, %v37_v11 }
  0x99   :  { %v43_v14 = vsel %vm26_vm0, %v39_v13, 0.0 }
  0x9a   :  { %44 = vadd.xlane.f32.xlu1 %v43_v14 }
 0x11f   :  { %v42_v18 = vpop.xlane.xlu1 %41 }
 0x120   :  { %v46_v19 = vmul.f32 0.03125, %v42_v18 }
 0x122   :  { %v48_v20 = vadd.f32 1e-05, %v46_v19 }
 0x123   :  { %v45_v21 = vpop.xlane.xlu1 %44 }
 0x124   :  { %204 = vrsqrt.f32 %v48_v20  ;;  %v47_v22 = vmul.f32 0.03125, %v45_v21 }
 0x126   :  { %v49_v23 = vadd.f32 1e-05, %v47_v22 }
 0x128   :  { %206 = vrsqrt.f32 %v49_v23 }
 0x131   :  { %v205_v24 = vpop.eup %204 }
 0x132   :  { %v52_v26 = vmul.f32 %v205_v24, %v36_v7 }
 0x134   :  { %v61_v28 = vmul.f32 %v165_v25, %v52_v26 }
 0x135   :  { %v207_v29 = vpop.eup %206 }
 0x136   :  { %v70_v30 = vadd.f32 %v166_v27, %v61_v28  ;;  %v53_v31 = vmul.f32 %v207_v29, %v37_v11 }
 0x138   :  { %v175_v32 = vpack.c.bf16 %v70_v30, %v70_v30  ;;  %v62_v33 = vmul.f32 %v165_v25, %v53_v31 }
 0x13a   :  { %81 = vst.msk [vmem:[#allocation2] sm:$0xf] %vm80_vm2, %v175_v32  ;;  %v71_v34 = vadd.f32 %v166_v27, %v62_v33 }
 0x13c   :  { %v176_v35 = vpack.c.bf16 %v71_v34, %v71_v34 }
 0x13e   :  { %82 = vst.msk [vmem:[#allocation2 + $0x4] sm:$0xf] %vm80_vm2, %v176_v35 }
 0x145   :  { %v203_v36 = vld [vmem:[#allocation2] sm:$0xff]  }
 0x146   :  { %196 = vmatmul.mubr.msk.bf16.vlgmr.msra.gmra.mxu0 %vm26_vm0, %v203_v36 }
 0x206   :  { %v144_v37 = vpop.f32.mrf.mxu0 }
 0x208   :  { %v197_v38 = vpop.f32.mrf.mxu0 }
 0x20a   :  { %v147_v39 = vpop.f32.mrf.mxu0 }
 0x20b   :  { %v186_v40 = vpack.c.bf16 %v147_v39, %v144_v37 }
 0x20c   :  { %v198_v41 = vpop.f32.mrf.mxu0 }
 0x20d   :  { %187 = vst [vmem:[%s262_s4] sm:$0xff] %v186_v40  }

</bundles_post_ra>
